<compile_context>
chip_gen: v7x
topology: tpu7x:2x2x1
jax: 0.10.0
libtpu: 0.0.40
codegen_flags: <defaults>
</compile_context>

<pallas_src>
import numpy as np
import jax
import jax.numpy as jnp
from jax.experimental import pallas as pl
from jax.experimental.pallas import tpu as pltpu

NEG_INF = -1.0e12  # matches masked_fill(value=-1e12) in the PyTorch code
VMEM_LIMIT = 32 * 1024 * 1024


def _round_up(x, m):
    return (x + m - 1) // m * m


# ----------------------------------------------------------------------------
# Kernel A: one decoder time step per grid iteration (state in VMEM scratch).
# ----------------------------------------------------------------------------
def recurrent_kernel(ys_e_ref, enc_mem_ref, enc_memT_ref, dec_mem_ref,
                     dec_memT_ref, enc_madd_ref, dec_madd_ref, init_h_ref,
                     red_we_ref, red_wc_ref, red_b_ref,
                     gru_wi_ref, gru_wh_ref, gru_bi_ref, gru_bh_ref,
                     wA_ref, wB_ref, wO_ref, gate_b_ref,
                     wco_ref, wcc_ref, concat_b_ref,
                     out_ref, ctx_sc, h_sc):
    t = pl.program_id(0)
    L = init_h_ref.shape[0]
    H = init_h_ref.shape[2]

    @pl.when(t == 0)
    def _():
        ctx_sc[...] = jnp.zeros_like(ctx_sc)
        h_sc[...] = init_h_ref[...]

    emb = ys_e_ref[0]                          # (Bp, E)   teacher forcing
    ctx_prev = ctx_sc[...]                     # (Bp, H)

    # reduce_layer([emb | ctx_prev]) as two accumulating matmuls (no concat).
    inp = (jnp.dot(emb, red_we_ref[...], preferred_element_type=jnp.float32)
           + jnp.dot(ctx_prev, red_wc_ref[...],
                     preferred_element_type=jnp.float32)
           + red_b_ref[...])                   # (Bp, E)

    # Multi-layer GRU step (PyTorch gate order r, z, n), split i/h matmuls.
    for l in range(L):
        h_prev = h_sc[l]                       # (Bp, H)
        gi = (jnp.dot(inp, gru_wi_ref[l], preferred_element_type=jnp.float32)
              + gru_bi_ref[l])                 # (Bp, 3H)
        gh = (jnp.dot(h_prev, gru_wh_ref[l],
                      preferred_element_type=jnp.float32)
              + gru_bh_ref[l])                 # (Bp, 3H)
        r = jax.nn.sigmoid(gi[:, :H] + gh[:, :H])
        z = jax.nn.sigmoid(gi[:, H:2 * H] + gh[:, H:2 * H])
        n = jnp.tanh(gi[:, 2 * H:] + r * gh[:, 2 * H:])
        h_new = (1.0 - z) * n + z * h_prev
        h_sc[l] = h_new
        inp = h_new
    output = inp                               # (Bp, H)

    def attention(query, mem, memT, mask_add):
        # energy: contract over H on sublanes (memT is (Bp, H, S)).
        energy = jnp.sum(query[:, :, None] * memT, axis=1) + mask_add  # (Bp,S)
        m = jnp.max(energy, axis=-1, keepdims=True)
        e = jnp.exp(energy - m)
        s = jnp.sum(e, axis=-1, keepdims=True)
        attn = e * pl.reciprocal(s, approx=True)
        # context: contract over S on sublanes (mem is (Bp, S, H)).
        return jnp.sum(attn[:, :, None] * mem, axis=1)                 # (Bp,H)

    ctxA = attention(output, enc_mem_ref[...], enc_memT_ref[...],
                     enc_madd_ref[...])
    ctxB = attention(output, dec_mem_ref[...], dec_memT_ref[...],
                     dec_madd_ref[...])

    # g = sigmoid(ctxA@Wa + ctxB@Wb + out@Wo + (ba+bb+bo))
    g = jax.nn.sigmoid(
        jnp.dot(ctxA, wA_ref[...], preferred_element_type=jnp.float32)
        + jnp.dot(ctxB, wB_ref[...], preferred_element_type=jnp.float32)
        + jnp.dot(output, wO_ref[...], preferred_element_type=jnp.float32)
        + gate_b_ref[...])
    ctx = g * ctxA + (1.0 - g) * ctxB
    ctx_sc[...] = ctx

    # concat_layer([output | ctx]) split into two dots; vocab matmul hoisted
    # out of the recurrence (done in logit_kernel).
    logit_in = jnp.tanh(
        jnp.dot(output, wco_ref[...], preferred_element_type=jnp.float32)
        + jnp.dot(ctx, wcc_ref[...], preferred_element_type=jnp.float32)
        + concat_b_ref[...])                   # (Bp, H)
    out_ref[0] = logit_in


# ----------------------------------------------------------------------------
# Kernel B: hoisted vocab projection, (row-tile, vocab-tile) parallel grid.
# ----------------------------------------------------------------------------
def logit_kernel(x_ref, w_ref, b_ref, out_ref):
    out_ref[...] = (jnp.dot(x_ref[...], w_ref[...],
                            preferred_element_type=jnp.float32)
                    + b_ref[...]).astype(out_ref.dtype)


def decode_forward(params, encoder_outputs, decoder_emb, init_states,
                   encoder_mask, label, decoder_mask, scheduled_probs=1.0):
    # Only the teacher-forcing path (scheduled_probs >= 1.0) is implemented.
    assert scheduled_probs >= 1.0
    B, T = label.shape
    L, _, H = init_states.shape
    E = params['embedding'].shape[1]
    V = params['logit_w'].shape[0]
    assert params['gru_w_ih'].shape[-1] == H, \
        "stacked gru_w_ih assumes embedding_size == hidden_size"

    f32 = jnp.float32
    Bp = _round_up(B, 8)       # sublane-align batch
    Vp = _round_up(V, 128)     # lane-align vocab -> dense logits stores

    # --- embedding gather (plain JAX glue), batch-padded, time-major ---
    label_p = jnp.zeros((Bp, T), label.dtype).at[:B].set(label)
    ys_e = params['embedding'][label_p].astype(f32)          # (Bp, T, E)
    ys_e_tm = jnp.transpose(ys_e, (1, 0, 2))                  # (T, Bp, E)

    def pad_b(x):
        x = x.astype(f32)
        pad = [(0, Bp - B)] + [(0, 0)] * (x.ndim - 1)
        return jnp.pad(x, pad)

    enc_mem = pad_b(encoder_outputs)                          # (Bp, Se, H)
    dec_mem = pad_b(decoder_emb)                              # (Bp, Sd, H)
    enc_memT = jnp.transpose(enc_mem, (0, 2, 1))              # (Bp, H, Se)
    dec_memT = jnp.transpose(dec_mem, (0, 2, 1))              # (Bp, H, Sd)
    enc_madd = jnp.where(pad_b(encoder_mask) == 0, NEG_INF, 0.0).astype(f32)
    dec_madd = jnp.where(pad_b(decoder_mask) == 0, NEG_INF, 0.0).astype(f32)
    init_h = jnp.pad(init_states.astype(f32),
                     ((0, 0), (0, Bp - B), (0, 0)))           # (L, Bp, H)

    # --- pre-transposed / split weights, all (in, out) layout, no zero pads ---
    red_wT = params['reduce_w'].T.astype(f32)                 # (E+H, E)
    red_we, red_wc = red_wT[:E], red_wT[E:]
    red_b = params['reduce_b'][None, :].astype(f32)           # (1, E)

    gru_wi = jnp.transpose(params['gru_w_ih'], (0, 2, 1)).astype(f32)  # (L,E,3H)
    gru_wh = jnp.transpose(params['gru_w_hh'], (0, 2, 1)).astype(f32)  # (L,H,3H)
    gru_bi = params['gru_b_ih'][:, None, :].astype(f32)       # (L, 1, 3H)
    gru_bh = params['gru_b_hh'][:, None, :].astype(f32)       # (L, 1, 3H)

    wA = params['ctxA_w'].T.astype(f32)                       # (H, H)
    wB = params['ctxB_w'].T.astype(f32)
    wO = params['out_w'].T.astype(f32)
    gate_b = (params['ctxA_b'] + params['ctxB_b']
              + params['out_b'])[None, :].astype(f32)         # (1, H)

    concat_wT = params['concat_w'].T.astype(f32)              # (2H, H)
    wco, wcc = concat_wT[:H], concat_wT[H:]
    concat_b = params['concat_b'][None, :].astype(f32)        # (1, H)

    logit_w = jnp.zeros((H, Vp), f32).at[:, :V].set(params['logit_w'].T.astype(f32))
    logit_b = jnp.zeros((1, Vp), f32).at[0, :V].set(params['logit_b'].astype(f32))

    # ---------------- Kernel A: recurrence over grid=(T,) ----------------
    const_inputs = [enc_mem, enc_memT, dec_mem, dec_memT, enc_madd, dec_madd,
                    init_h, red_we, red_wc, red_b, gru_wi, gru_wh, gru_bi,
                    gru_bh, wA, wB, wO, gate_b, wco, wcc, concat_b]

    def _const_spec(arr):
        nd = arr.ndim
        return pl.BlockSpec(arr.shape, lambda t, nd=nd: (0,) * nd)

    logit_in_tm = pl.pallas_call(
        recurrent_kernel,
        out_shape=jax.ShapeDtypeStruct((T, Bp, H), f32),
        grid=(T,),
        in_specs=[pl.BlockSpec((1, Bp, E), lambda t: (t, 0, 0))]
                 + [_const_spec(a) for a in const_inputs],
        out_specs=pl.BlockSpec((1, Bp, H), lambda t: (t, 0, 0)),
        scratch_shapes=[pltpu.VMEM((Bp, H), f32),      # ctx carry
                        pltpu.VMEM((L, Bp, H), f32)],  # GRU hidden carry
        compiler_params=pltpu.CompilerParams(
            dimension_semantics=("arbitrary",),
            vmem_limit_bytes=VMEM_LIMIT),
    )(ys_e_tm, *const_inputs)

    # ---------------- Kernel B: hoisted vocab projection ----------------
    M = T * Bp                       # always a multiple of 8
    if M <= 512:
        tm = M
    else:
        tm = next(c for c in (512, 256, 128, 64, 32, 16, 8) if M % c == 0)
    tn = next(c for c in (512, 256, 128) if Vp % c == 0)

    x_flat = logit_in_tm.reshape(M, H)
    logits_flat = pl.pallas_call(
        logit_kernel,
        out_shape=jax.ShapeDtypeStruct((M, Vp), f32),
        grid=(M // tm, Vp // tn),
        in_specs=[pl.BlockSpec((tm, H), lambda i, j: (i, 0)),
                  pl.BlockSpec((H, tn), lambda i, j: (0, j)),
                  pl.BlockSpec((1, tn), lambda i, j: (0, j))],
        out_specs=pl.BlockSpec((tm, tn), lambda i, j: (i, j)),
        compiler_params=pltpu.CompilerParams(
            dimension_semantics=("parallel", "parallel"),
            vmem_limit_bytes=VMEM_LIMIT),
    )(x_flat, logit_w, logit_b)

    # (T, Bp, Vp) -> (B, T, V) to match torch.stack(logits, dim=1)
    logits_tm = logits_flat.reshape(T, Bp, Vp)
    return jnp.transpose(logits_tm[:, :B, :V], (1, 0, 2))


# ----------------------------------------------------------------------------
# Pure-JAX reference mirroring the PyTorch forward (scheduled_probs = 1).
# ----------------------------------------------------------------------------
def ref_forward(params, enc, dec, init_h, enc_mask, label, dec_mask):
    B, T = label.shape
    H = enc.shape[-1]
    L = init_h.shape[0]
    ys_e = params['embedding'][label]
    h = init_h
    ctx = jnp.zeros((B, H), jnp.float32)
    logits = []

    def lin(x, w, b):
        return x @ w.T + b

    def attn(q, mem, mask):
        e = jnp.einsum('bh,bsh->bs', q, mem)
        e = jnp.where(mask == 0, NEG_INF, e)
        a = jax.nn.softmax(e, axis=-1)
        return jnp.einsum('bs,bsh->bh', a, mem)

    for i in range(T):
        emb = ys_e[:, i, :]
        x = jnp.concatenate([emb, ctx], -1)
        inp = lin(x, params['reduce_w'], params['reduce_b'])
        new_h = []
        for l in range(L):
            hp = h[l]
            gi = lin(inp, params['gru_w_ih'][l], params['gru_b_ih'][l])
            gh = lin(hp, params['gru_w_hh'][l], params['gru_b_hh'][l])
            r = jax.nn.sigmoid(gi[:, :H] + gh[:, :H])
            z = jax.nn.sigmoid(gi[:, H:2 * H] + gh[:, H:2 * H])
            n = jnp.tanh(gi[:, 2 * H:] + r * gh[:, 2 * H:])
            hn = (1 - z) * n + z * hp
            new_h.append(hn)
            inp = hn
        h = jnp.stack(new_h, 0)
        out = inp
        cA = attn(out, enc, enc_mask)
        cB = attn(out, dec, dec_mask)
        g = jax.nn.sigmoid(lin(cA, params['ctxA_w'], params['ctxA_b'])
                           + lin(cB, params['ctxB_w'], params['ctxB_b'])
                           + lin(out, params['out_w'], params['out_b']))
        ctx = g * cA + (1 - g) * cB
        li = jnp.tanh(lin(jnp.concatenate([out, ctx], -1),
                          params['concat_w'], params['concat_b']))
        logits.append(lin(li, params['logit_w'], params['logit_b']))
    return jnp.stack(logits, axis=1)


def init_params(key, vocab_size, hidden_size, embedding_size, num_layers):
    assert embedding_size == hidden_size, "weights stacked per layer assume E == H"
    H, E, V, L = hidden_size, embedding_size, vocab_size, num_layers
    ks = jax.random.split(key, 16)

    def rnd(k, shape, scale=0.1):
        return (scale * jax.random.normal(k, shape)).astype(jnp.float32)

    return {
        'embedding': rnd(ks[0], (V, E), 0.5),
        'gru_w_ih': rnd(ks[1], (L, 3 * H, E)),
        'gru_w_hh': rnd(ks[2], (L, 3 * H, H)),
        'gru_b_ih': rnd(ks[3], (L, 3 * H)),
        'gru_b_hh': rnd(ks[4], (L, 3 * H)),
        'reduce_w': rnd(ks[5], (E, E + H)),
        'reduce_b': rnd(ks[6], (E,)),
        'ctxA_w': rnd(ks[7], (H, H)),
        'ctxA_b': rnd(ks[8], (H,)),
        'ctxB_w': rnd(ks[9], (H, H)),
        'ctxB_b': rnd(ks[10], (H,)),
        'out_w': rnd(ks[11], (H, H)),
        'out_b': rnd(ks[12], (H,)),
        'concat_w': rnd(ks[13], (H, 2 * H)),
        'concat_b': rnd(ks[14], (H,)),
        'logit_w': rnd(ks[15], (V, H)),
        'logit_b': jnp.zeros((V,), jnp.float32),
    }


if __name__ == "__main__":
    vocab_size, hidden_size, embedding_size, num_layers = 64, 32, 32, 2
    B, T, S_enc, S_dec = 2, 6, 12, 8

    key = jax.random.PRNGKey(0)
    kp, k1, k2, k3, k4 = jax.random.split(key, 5)
    params = init_params(kp, vocab_size, hidden_size, embedding_size, num_layers)

    encoder_outputs = (0.3 * jax.random.normal(k1, (B, S_enc, hidden_size))).astype(jnp.float32)
    decoder_emb = (0.3 * jax.random.normal(k2, (B, S_dec, hidden_size))).astype(jnp.float32)
    init_states = (0.1 * jax.random.normal(k3, (num_layers, B, hidden_size))).astype(jnp.float32)
    label = jax.random.randint(k4, (B, T), 0, vocab_size)

    encoder_mask = jnp.ones((B, S_enc), jnp.float32).at[1, S_enc - 3:].set(0.0)
    decoder_mask = jnp.ones((B, S_dec), jnp.float32).at[1, S_dec - 2:].set(0.0)

    logits = decode_forward(params, encoder_outputs, decoder_emb, init_states,
                            encoder_mask, label, decoder_mask, scheduled_probs=1.0)
    logits = jax.block_until_ready(logits)
    assert logits.shape == (B, T, vocab_size)

    ref = jax.block_until_ready(
        ref_forward(params, encoder_outputs, decoder_emb, init_states,
                    encoder_mask, label, decoder_mask))
    np.testing.assert_allclose(np.asarray(logits), np.asarray(ref),
                               rtol=3e-3, atol=3e-3)
    print("KERNEL_OK")
</pallas_src>

<mosaic_0001>
module attributes {stable_mosaic.version = 11 : i64} {
  func.func @recurrent_kernel(%arg0: i32, %arg1: memref<1x8x32xf32, #tpu.memory_space<vmem>>, %arg2: memref<8x12x32xf32, #tpu.memory_space<vmem>>, %arg3: memref<8x32x12xf32, #tpu.memory_space<vmem>>, %arg4: memref<8x8x32xf32, #tpu.memory_space<vmem>>, %arg5: memref<8x32x8xf32, #tpu.memory_space<vmem>>, %arg6: memref<8x12xf32, #tpu.memory_space<vmem>>, %arg7: memref<8x8xf32, #tpu.memory_space<vmem>>, %arg8: memref<2x8x32xf32, #tpu.memory_space<vmem>>, %arg9: memref<32x32xf32, #tpu.memory_space<vmem>>, %arg10: memref<32x32xf32, #tpu.memory_space<vmem>>, %arg11: memref<1x32xf32, #tpu.memory_space<vmem>>, %arg12: memref<2x32x96xf32, #tpu.memory_space<vmem>>, %arg13: memref<2x32x96xf32, #tpu.memory_space<vmem>>, %arg14: memref<2x1x96xf32, #tpu.memory_space<vmem>>, %arg15: memref<2x1x96xf32, #tpu.memory_space<vmem>>, %arg16: memref<32x32xf32, #tpu.memory_space<vmem>>, %arg17: memref<32x32xf32, #tpu.memory_space<vmem>>, %arg18: memref<32x32xf32, #tpu.memory_space<vmem>>, %arg19: memref<1x32xf32, #tpu.memory_space<vmem>>, %arg20: memref<32x32xf32, #tpu.memory_space<vmem>>, %arg21: memref<32x32xf32, #tpu.memory_space<vmem>>, %arg22: memref<1x32xf32, #tpu.memory_space<vmem>>, %arg23: memref<1x8x32xf32, #tpu.memory_space<vmem>>, %arg24: memref<8x32xf32, #tpu.memory_space<vmem>>, %arg25: memref<2x8x32xf32, #tpu.memory_space<vmem>>) attributes {dimension_semantics = [#tpu.dimension_semantics<arbitrary>], iteration_bounds = array<i64: 6>, scalar_prefetch = 0 : i64, scratch_operands = 2 : i64, tpu.core_type = #tpu.core_type<tc>, window_params = [{transform_indices = @transform_0, window_bounds = array<i64: 1, 8, 32>}, {pipeline_mode = #tpu.pipeline_mode<synchronous>, transform_indices = @transform_1, window_bounds = array<i64: 8, 12, 32>}, {pipeline_mode = #tpu.pipeline_mode<synchronous>, transform_indices = @transform_2, window_bounds = array<i64: 8, 32, 12>}, {pipeline_mode = #tpu.pipeline_mode<synchronous>, transform_indices = @transform_3, window_bounds = array<i64: 8, 8, 32>}, {pipeline_mode = #tpu.pipeline_mode<synchronous>, transform_indices = @transform_4, window_bounds = array<i64: 8, 32, 8>}, {pipeline_mode = #tpu.pipeline_mode<synchronous>, transform_indices = @transform_5, window_bounds = array<i64: 8, 12>}, {pipeline_mode = #tpu.pipeline_mode<synchronous>, transform_indices = @transform_6, window_bounds = array<i64: 8, 8>}, {pipeline_mode = #tpu.pipeline_mode<synchronous>, transform_indices = @transform_7, window_bounds = array<i64: 2, 8, 32>}, {pipeline_mode = #tpu.pipeline_mode<synchronous>, transform_indices = @transform_8, window_bounds = array<i64: 32, 32>}, {pipeline_mode = #tpu.pipeline_mode<synchronous>, transform_indices = @transform_9, window_bounds = array<i64: 32, 32>}, {pipeline_mode = #tpu.pipeline_mode<synchronous>, transform_indices = @transform_10, window_bounds = array<i64: 1, 32>}, {pipeline_mode = #tpu.pipeline_mode<synchronous>, transform_indices = @transform_11, window_bounds = array<i64: 2, 32, 96>}, {pipeline_mode = #tpu.pipeline_mode<synchronous>, transform_indices = @transform_12, window_bounds = array<i64: 2, 32, 96>}, {pipeline_mode = #tpu.pipeline_mode<synchronous>, transform_indices = @transform_13, window_bounds = array<i64: 2, 1, 96>}, {pipeline_mode = #tpu.pipeline_mode<synchronous>, transform_indices = @transform_14, window_bounds = array<i64: 2, 1, 96>}, {pipeline_mode = #tpu.pipeline_mode<synchronous>, transform_indices = @transform_15, window_bounds = array<i64: 32, 32>}, {pipeline_mode = #tpu.pipeline_mode<synchronous>, transform_indices = @transform_16, window_bounds = array<i64: 32, 32>}, {pipeline_mode = #tpu.pipeline_mode<synchronous>, transform_indices = @transform_17, window_bounds = array<i64: 32, 32>}, {pipeline_mode = #tpu.pipeline_mode<synchronous>, transform_indices = @transform_18, window_bounds = array<i64: 1, 32>}, {pipeline_mode = #tpu.pipeline_mode<synchronous>, transform_indices = @transform_19, window_bounds = array<i64: 32, 32>}, {pipeline_mode = #tpu.pipeline_mode<synchronous>, transform_indices = @transform_20, window_bounds = array<i64: 32, 32>}, {pipeline_mode = #tpu.pipeline_mode<synchronous>, transform_indices = @transform_21, window_bounds = array<i64: 1, 32>}, {transform_indices = @transform_22, window_bounds = array<i64: 1, 8, 32>}]} {
    %c0_i32 = arith.constant 0 : i32
    %0 = arith.cmpi eq, %arg0, %c0_i32 : i32
    %1 = arith.extui %0 : i1 to i32
    %c0_i32_0 = arith.constant 0 : i32
    %2 = arith.cmpi ne, %1, %c0_i32_0 : i32
    scf.if %2 {
      %cst_107 = arith.constant 0.000000e+00 : f32
      %182 = vector.broadcast %cst_107 : f32 to vector<8x32xf32>
      %c0_108 = arith.constant 0 : index
      %c0_109 = arith.constant 0 : index
      %183 = vector.load %arg24[%c0_108, %c0_109] : memref<8x32xf32, #tpu.memory_space<vmem>>, vector<8x32xf32>
      tpu.vector_store %arg24[%c0_108, %c0_109], %182 {strides = array<i32>} : memref<8x32xf32, #tpu.memory_space<vmem>>, vector<8x32xf32>,
      %c0_110 = arith.constant 0 : index
      %c0_111 = arith.constant 0 : index
      %c0_112 = arith.constant 0 : index
      %184 = vector.load %arg8[%c0_110, %c0_111, %c0_112] : memref<2x8x32xf32, #tpu.memory_space<vmem>>, vector<2x8x32xf32>
      %c0_113 = arith.constant 0 : index
      %c0_114 = arith.constant 0 : index
      %c0_115 = arith.constant 0 : index
      %185 = vector.load %arg25[%c0_113, %c0_114, %c0_115] : memref<2x8x32xf32, #tpu.memory_space<vmem>>, vector<2x8x32xf32>
      tpu.vector_store %arg25[%c0_113, %c0_114, %c0_115], %184 {strides = array<i32>} : memref<2x8x32xf32, #tpu.memory_space<vmem>>, vector<2x8x32xf32>,
    } else {
    }
    %c0 = arith.constant 0 : index
    %c0_1 = arith.constant 0 : index
    %c0_2 = arith.constant 0 : index
    %3 = vector.load %arg1[%c0, %c0_1, %c0_2] : memref<1x8x32xf32, #tpu.memory_space<vmem>>, vector<1x8x32xf32>
    %4 = vector.shape_cast %3 : vector<1x8x32xf32> to vector<8x32xf32>
    %c0_3 = arith.constant 0 : index
    %c0_4 = arith.constant 0 : index
    %5 = vector.load %arg24[%c0_3, %c0_4] : memref<8x32xf32, #tpu.memory_space<vmem>>, vector<8x32xf32>
    %c0_5 = arith.constant 0 : index
    %c0_6 = arith.constant 0 : index
    %6 = vector.load %arg9[%c0_5, %c0_6] : memref<32x32xf32, #tpu.memory_space<vmem>>, vector<32x32xf32>
    %cst = arith.constant dense<0.000000e+00> : vector<8x32xf32>
    %7 = tpu.matmul %4, %6, %cst {dimension_numbers = #tpu.dot_dimension_numbers<[1], [0], [0], [1], [0, 0, 1, 1], [], []>} : vector<8x32xf32>, vector<32x32xf32>, vector<8x32xf32> -> vector<8x32xf32>
    %c0_7 = arith.constant 0 : index
    %c0_8 = arith.constant 0 : index
    %8 = vector.load %arg10[%c0_7, %c0_8] : memref<32x32xf32, #tpu.memory_space<vmem>>, vector<32x32xf32>
    %cst_9 = arith.constant dense<0.000000e+00> : vector<8x32xf32>
    %9 = tpu.matmul %5, %8, %cst_9 {dimension_numbers = #tpu.dot_dimension_numbers<[1], [0], [0], [1], [0, 0, 1, 1], [], []>} : vector<8x32xf32>, vector<32x32xf32>, vector<8x32xf32> -> vector<8x32xf32>
    %10 = arith.addf %7, %9 : vector<8x32xf32>
    %c0_10 = arith.constant 0 : index
    %c0_11 = arith.constant 0 : index
    %11 = vector.load %arg11[%c0_10, %c0_11] : memref<1x32xf32, #tpu.memory_space<vmem>>, vector<1x32xf32>
    %12 = vector.broadcast %11 : vector<1x32xf32> to vector<8x32xf32>
    %13 = arith.addf %10, %12 : vector<8x32xf32>
    %c0_12 = arith.constant 0 : index
    %c0_13 = arith.constant 0 : index
    %c0_14 = arith.constant 0 : index
    %14 = vector.load %arg25[%c0_12, %c0_13, %c0_14] : memref<2x8x32xf32, #tpu.memory_space<vmem>>, vector<1x8x32xf32>
    %15 = vector.shape_cast %14 : vector<1x8x32xf32> to vector<8x32xf32>
    %c0_15 = arith.constant 0 : index
    %c0_16 = arith.constant 0 : index
    %c0_17 = arith.constant 0 : index
    %16 = vector.load %arg12[%c0_15, %c0_16, %c0_17] : memref<2x32x96xf32, #tpu.memory_space<vmem>>, vector<1x32x96xf32>
    %17 = vector.shape_cast %16 : vector<1x32x96xf32> to vector<32x96xf32>
    %cst_18 = arith.constant dense<0.000000e+00> : vector<8x96xf32>
    %18 = tpu.matmul %13, %17, %cst_18 {dimension_numbers = #tpu.dot_dimension_numbers<[1], [0], [0], [1], [0, 0, 1, 1], [], []>} : vector<8x32xf32>, vector<32x96xf32>, vector<8x96xf32> -> vector<8x96xf32>
    %c0_19 = arith.constant 0 : index
    %c0_20 = arith.constant 0 : index
    %c0_21 = arith.constant 0 : index
    %19 = vector.load %arg14[%c0_19, %c0_20, %c0_21] : memref<2x1x96xf32, #tpu.memory_space<vmem>>, vector<1x1x96xf32>
    %20 = vector.shape_cast %19 : vector<1x1x96xf32> to vector<1x96xf32>
    %21 = vector.broadcast %20 : vector<1x96xf32> to vector<8x96xf32>
    %22 = arith.addf %18, %21 : vector<8x96xf32>
    %c0_22 = arith.constant 0 : index
    %c0_23 = arith.constant 0 : index
    %c0_24 = arith.constant 0 : index
    %23 = vector.load %arg13[%c0_22, %c0_23, %c0_24] : memref<2x32x96xf32, #tpu.memory_space<vmem>>, vector<1x32x96xf32>
    %24 = vector.shape_cast %23 : vector<1x32x96xf32> to vector<32x96xf32>
    %cst_25 = arith.constant dense<0.000000e+00> : vector<8x96xf32>
    %25 = tpu.matmul %15, %24, %cst_25 {dimension_numbers = #tpu.dot_dimension_numbers<[1], [0], [0], [1], [0, 0, 1, 1], [], []>} : vector<8x32xf32>, vector<32x96xf32>, vector<8x96xf32> -> vector<8x96xf32>
    %c0_26 = arith.constant 0 : index
    %c0_27 = arith.constant 0 : index
    %c0_28 = arith.constant 0 : index
    %26 = vector.load %arg15[%c0_26, %c0_27, %c0_28] : memref<2x1x96xf32, #tpu.memory_space<vmem>>, vector<1x1x96xf32>
    %27 = vector.shape_cast %26 : vector<1x1x96xf32> to vector<1x96xf32>
    %28 = vector.broadcast %27 : vector<1x96xf32> to vector<8x96xf32>
    %29 = arith.addf %25, %28 : vector<8x96xf32>
    %30 = vector.extract_strided_slice %22 {offsets = [0, 0], sizes = [8, 32], strides = [1, 1]} : vector<8x96xf32> to vector<8x32xf32>
    %31 = vector.extract_strided_slice %29 {offsets = [0, 0], sizes = [8, 32], strides = [1, 1]} : vector<8x96xf32> to vector<8x32xf32>
    %32 = arith.addf %30, %31 : vector<8x32xf32>
    %33 = arith.negf %32 : vector<8x32xf32>
    %34 = math.exp %33 : vector<8x32xf32>
    %cst_29 = arith.constant 1.000000e+00 : f32
    %35 = vector.broadcast %cst_29 : f32 to vector<8x32xf32>
    %36 = arith.addf %35, %34 : vector<8x32xf32>
    %37 = arith.divf %35, %36 : vector<8x32xf32>
    %38 = vector.extract_strided_slice %22 {offsets = [0, 32], sizes = [8, 32], strides = [1, 1]} : vector<8x96xf32> to vector<8x32xf32>
    %39 = vector.extract_strided_slice %29 {offsets = [0, 32], sizes = [8, 32], strides = [1, 1]} : vector<8x96xf32> to vector<8x32xf32>
    %40 = arith.addf %38, %39 : vector<8x32xf32>
    %41 = arith.negf %40 : vector<8x32xf32>
    %42 = math.exp %41 : vector<8x32xf32>
    %cst_30 = arith.constant 1.000000e+00 : f32
    %43 = vector.broadcast %cst_30 : f32 to vector<8x32xf32>
    %44 = arith.addf %43, %42 : vector<8x32xf32>
    %45 = arith.divf %43, %44 : vector<8x32xf32>
    %46 = vector.extract_strided_slice %22 {offsets = [0, 64], sizes = [8, 32], strides = [1, 1]} : vector<8x96xf32> to vector<8x32xf32>
    %47 = vector.extract_strided_slice %29 {offsets = [0, 64], sizes = [8, 32], strides = [1, 1]} : vector<8x96xf32> to vector<8x32xf32>
    %48 = arith.mulf %37, %47 : vector<8x32xf32>
    %49 = arith.addf %46, %48 : vector<8x32xf32>
    %50 = math.tanh %49 : vector<8x32xf32>
    %cst_31 = arith.constant 1.000000e+00 : f32
    %51 = vector.broadcast %cst_31 : f32 to vector<8x32xf32>
    %52 = arith.subf %51, %45 : vector<8x32xf32>
    %53 = arith.mulf %52, %50 : vector<8x32xf32>
    %54 = arith.mulf %45, %15 : vector<8x32xf32>
    %55 = arith.addf %53, %54 : vector<8x32xf32>
    %c0_32 = arith.constant 0 : index
    %c0_33 = arith.constant 0 : index
    %c0_34 = arith.constant 0 : index
    %56 = vector.load %arg25[%c0_32, %c0_33, %c0_34] : memref<2x8x32xf32, #tpu.memory_space<vmem>>, vector<1x8x32xf32>
    %57 = vector.shape_cast %56 : vector<1x8x32xf32> to vector<8x32xf32>
    %58 = vector.shape_cast %55 : vector<8x32xf32> to vector<1x8x32xf32>
    tpu.vector_store %arg25[%c0_32, %c0_33, %c0_34], %58 {strides = array<i32>} : memref<2x8x32xf32, #tpu.memory_space<vmem>>, vector<1x8x32xf32>,
    %c1 = arith.constant 1 : index
    %c0_35 = arith.constant 0 : index
    %c0_36 = arith.constant 0 : index
    %59 = vector.load %arg25[%c1, %c0_35, %c0_36] : memref<2x8x32xf32, #tpu.memory_space<vmem>>, vector<1x8x32xf32>
    %60 = vector.shape_cast %59 : vector<1x8x32xf32> to vector<8x32xf32>
    %c1_37 = arith.constant 1 : index
    %c0_38 = arith.constant 0 : index
    %c0_39 = arith.constant 0 : index
    %61 = vector.load %arg12[%c1_37, %c0_38, %c0_39] : memref<2x32x96xf32, #tpu.memory_space<vmem>>, vector<1x32x96xf32>
    %62 = vector.shape_cast %61 : vector<1x32x96xf32> to vector<32x96xf32>
    %cst_40 = arith.constant dense<0.000000e+00> : vector<8x96xf32>
    %63 = tpu.matmul %55, %62, %cst_40 {dimension_numbers = #tpu.dot_dimension_numbers<[1], [0], [0], [1], [0, 0, 1, 1], [], []>} : vector<8x32xf32>, vector<32x96xf32>, vector<8x96xf32> -> vector<8x96xf32>
    %c1_41 = arith.constant 1 : index
    %c0_42 = arith.constant 0 : index
    %c0_43 = arith.constant 0 : index
    %64 = vector.load %arg14[%c1_41, %c0_42, %c0_43] : memref<2x1x96xf32, #tpu.memory_space<vmem>>, vector<1x1x96xf32>
    %65 = vector.shape_cast %64 : vector<1x1x96xf32> to vector<1x96xf32>
    %66 = vector.broadcast %65 : vector<1x96xf32> to vector<8x96xf32>
    %67 = arith.addf %63, %66 : vector<8x96xf32>
    %c1_44 = arith.constant 1 : index
    %c0_45 = arith.constant 0 : index
    %c0_46 = arith.constant 0 : index
    %68 = vector.load %arg13[%c1_44, %c0_45, %c0_46] : memref<2x32x96xf32, #tpu.memory_space<vmem>>, vector<1x32x96xf32>
    %69 = vector.shape_cast %68 : vector<1x32x96xf32> to vector<32x96xf32>
    %cst_47 = arith.constant dense<0.000000e+00> : vector<8x96xf32>
    %70 = tpu.matmul %60, %69, %cst_47 {dimension_numbers = #tpu.dot_dimension_numbers<[1], [0], [0], [1], [0, 0, 1, 1], [], []>} : vector<8x32xf32>, vector<32x96xf32>, vector<8x96xf32> -> vector<8x96xf32>
    %c1_48 = arith.constant 1 : index
    %c0_49 = arith.constant 0 : index
    %c0_50 = arith.constant 0 : index
    %71 = vector.load %arg15[%c1_48, %c0_49, %c0_50] : memref<2x1x96xf32, #tpu.memory_space<vmem>>, vector<1x1x96xf32>
    %72 = vector.shape_cast %71 : vector<1x1x96xf32> to vector<1x96xf32>
    %73 = vector.broadcast %72 : vector<1x96xf32> to vector<8x96xf32>
    %74 = arith.addf %70, %73 : vector<8x96xf32>
    %75 = vector.extract_strided_slice %67 {offsets = [0, 0], sizes = [8, 32], strides = [1, 1]} : vector<8x96xf32> to vector<8x32xf32>
    %76 = vector.extract_strided_slice %74 {offsets = [0, 0], sizes = [8, 32], strides = [1, 1]} : vector<8x96xf32> to vector<8x32xf32>
    %77 = arith.addf %75, %76 : vector<8x32xf32>
    %78 = arith.negf %77 : vector<8x32xf32>
    %79 = math.exp %78 : vector<8x32xf32>
    %cst_51 = arith.constant 1.000000e+00 : f32
    %80 = vector.broadcast %cst_51 : f32 to vector<8x32xf32>
    %81 = arith.addf %80, %79 : vector<8x32xf32>
    %82 = arith.divf %80, %81 : vector<8x32xf32>
    %83 = vector.extract_strided_slice %67 {offsets = [0, 32], sizes = [8, 32], strides = [1, 1]} : vector<8x96xf32> to vector<8x32xf32>
    %84 = vector.extract_strided_slice %74 {offsets = [0, 32], sizes = [8, 32], strides = [1, 1]} : vector<8x96xf32> to vector<8x32xf32>
    %85 = arith.addf %83, %84 : vector<8x32xf32>
    %86 = arith.negf %85 : vector<8x32xf32>
    %87 = math.exp %86 : vector<8x32xf32>
    %cst_52 = arith.constant 1.000000e+00 : f32
    %88 = vector.broadcast %cst_52 : f32 to vector<8x32xf32>
    %89 = arith.addf %88, %87 : vector<8x32xf32>
    %90 = arith.divf %88, %89 : vector<8x32xf32>
    %91 = vector.extract_strided_slice %67 {offsets = [0, 64], sizes = [8, 32], strides = [1, 1]} : vector<8x96xf32> to vector<8x32xf32>
    %92 = vector.extract_strided_slice %74 {offsets = [0, 64], sizes = [8, 32], strides = [1, 1]} : vector<8x96xf32> to vector<8x32xf32>
    %93 = arith.mulf %82, %92 : vector<8x32xf32>
    %94 = arith.addf %91, %93 : vector<8x32xf32>
    %95 = math.tanh %94 : vector<8x32xf32>
    %cst_53 = arith.constant 1.000000e+00 : f32
    %96 = vector.broadcast %cst_53 : f32 to vector<8x32xf32>
    %97 = arith.subf %96, %90 : vector<8x32xf32>
    %98 = arith.mulf %97, %95 : vector<8x32xf32>
    %99 = arith.mulf %90, %60 : vector<8x32xf32>
    %100 = arith.addf %98, %99 : vector<8x32xf32>
    %c1_54 = arith.constant 1 : index
    %c0_55 = arith.constant 0 : index
    %c0_56 = arith.constant 0 : index
    %101 = vector.load %arg25[%c1_54, %c0_55, %c0_56] : memref<2x8x32xf32, #tpu.memory_space<vmem>>, vector<1x8x32xf32>
    %102 = vector.shape_cast %101 : vector<1x8x32xf32> to vector<8x32xf32>
    %103 = vector.shape_cast %100 : vector<8x32xf32> to vector<1x8x32xf32>
    tpu.vector_store %arg25[%c1_54, %c0_55, %c0_56], %103 {strides = array<i32>} : memref<2x8x32xf32, #tpu.memory_space<vmem>>, vector<1x8x32xf32>,
    %c0_57 = arith.constant 0 : index
    %c0_58 = arith.constant 0 : index
    %c0_59 = arith.constant 0 : index
    %104 = vector.load %arg2[%c0_57, %c0_58, %c0_59] : memref<8x12x32xf32, #tpu.memory_space<vmem>>, vector<8x12x32xf32>
    %c0_60 = arith.constant 0 : index
    %c0_61 = arith.constant 0 : index
    %c0_62 = arith.constant 0 : index
    %105 = vector.load %arg3[%c0_60, %c0_61, %c0_62] : memref<8x32x12xf32, #tpu.memory_space<vmem>>, vector<8x32x12xf32>
    %c0_63 = arith.constant 0 : index
    %c0_64 = arith.constant 0 : index
    %106 = vector.load %arg6[%c0_63, %c0_64] : memref<8x12xf32, #tpu.memory_space<vmem>>, vector<8x12xf32>
    %107 = vector.shape_cast %100 : vector<8x32xf32> to vector<8x32x1xf32>
    %108 = vector.broadcast %107 : vector<8x32x1xf32> to vector<8x32x12xf32>
    %109 = arith.mulf %108, %105 : vector<8x32x12xf32>
    %cst_65 = arith.constant dense<0.000000e+00> : vector<8x12xf32>
    %110 = vector.multi_reduction <add>, %109, %cst_65 [1] : vector<8x32x12xf32> to vector<8x12xf32>
    %111 = arith.addf %110, %106 : vector<8x12xf32>
    %cst_66 = arith.constant dense<0xFF800000> : vector<8xf32>
    %112 = vector.multi_reduction <maximumf>, %111, %cst_66 [1] : vector<8x12xf32> to vector<8xf32>
    %113 = vector.shape_cast %112 : vector<8xf32> to vector<8x1xf32>
    %114 = vector.broadcast %113 : vector<8x1xf32> to vector<8x12xf32>
    %115 = arith.subf %111, %114 : vector<8x12xf32>
    %116 = math.exp %115 : vector<8x12xf32>
    %cst_67 = arith.constant dense<0.000000e+00> : vector<8xf32>
    %117 = vector.multi_reduction <add>, %116, %cst_67 [1] : vector<8x12xf32> to vector<8xf32>
    %118 = vector.shape_cast %117 : vector<8xf32> to vector<8x1xf32>
    %119 = tpu.reciprocal %118 {approx = true} : vector<8x1xf32> -> vector<8x1xf32>
    %120 = vector.broadcast %119 : vector<8x1xf32> to vector<8x12xf32>
    %121 = arith.mulf %116, %120 : vector<8x12xf32>
    %122 = vector.shape_cast %121 : vector<8x12xf32> to vector<8x12x1xf32>
    %123 = vector.broadcast %122 : vector<8x12x1xf32> to vector<8x12x32xf32>
    %124 = arith.mulf %123, %104 : vector<8x12x32xf32>
    %cst_68 = arith.constant dense<0.000000e+00> : vector<8x32xf32>
    %125 = vector.multi_reduction <add>, %124, %cst_68 [1] : vector<8x12x32xf32> to vector<8x32xf32>
    %c0_69 = arith.constant 0 : index
    %c0_70 = arith.constant 0 : index
    %c0_71 = arith.constant 0 : index
    %126 = vector.load %arg4[%c0_69, %c0_70, %c0_71] : memref<8x8x32xf32, #tpu.memory_space<vmem>>, vector<8x8x32xf32>
    %c0_72 = arith.constant 0 : index
    %c0_73 = arith.constant 0 : index
    %c0_74 = arith.constant 0 : index
    %127 = vector.load %arg5[%c0_72, %c0_73, %c0_74] : memref<8x32x8xf32, #tpu.memory_space<vmem>>, vector<8x32x8xf32>
    %c0_75 = arith.constant 0 : index
    %c0_76 = arith.constant 0 : index
    %128 = vector.load %arg7[%c0_75, %c0_76] : memref<8x8xf32, #tpu.memory_space<vmem>>, vector<8x8xf32>
    %129 = vector.shape_cast %100 : vector<8x32xf32> to vector<8x32x1xf32>
    %130 = vector.broadcast %129 : vector<8x32x1xf32> to vector<8x32x8xf32>
    %131 = arith.mulf %130, %127 : vector<8x32x8xf32>
    %cst_77 = arith.constant dense<0.000000e+00> : vector<8x8xf32>
    %132 = vector.multi_reduction <add>, %131, %cst_77 [1] : vector<8x32x8xf32> to vector<8x8xf32>
    %133 = arith.addf %132, %128 : vector<8x8xf32>
    %cst_78 = arith.constant dense<0xFF800000> : vector<8xf32>
    %134 = vector.multi_reduction <maximumf>, %133, %cst_78 [1] : vector<8x8xf32> to vector<8xf32>
    %135 = vector.shape_cast %134 : vector<8xf32> to vector<8x1xf32>
    %136 = vector.broadcast %135 : vector<8x1xf32> to vector<8x8xf32>
    %137 = arith.subf %133, %136 : vector<8x8xf32>
    %138 = math.exp %137 : vector<8x8xf32>
    %cst_79 = arith.constant dense<0.000000e+00> : vector<8xf32>
    %139 = vector.multi_reduction <add>, %138, %cst_79 [1] : vector<8x8xf32> to vector<8xf32>
    %140 = vector.shape_cast %139 : vector<8xf32> to vector<8x1xf32>
    %141 = tpu.reciprocal %140 {approx = true} : vector<8x1xf32> -> vector<8x1xf32>
    %142 = vector.broadcast %141 : vector<8x1xf32> to vector<8x8xf32>
    %143 = arith.mulf %138, %142 : vector<8x8xf32>
    %144 = vector.shape_cast %143 : vector<8x8xf32> to vector<8x8x1xf32>
    %145 = vector.broadcast %144 : vector<8x8x1xf32> to vector<8x8x32xf32>
    %146 = arith.mulf %145, %126 : vector<8x8x32xf32>
    %cst_80 = arith.constant dense<0.000000e+00> : vector<8x32xf32>
    %147 = vector.multi_reduction <add>, %146, %cst_80 [1] : vector<8x8x32xf32> to vector<8x32xf32>
    %c0_81 = arith.constant 0 : index
    %c0_82 = arith.constant 0 : index
    %148 = vector.load %arg16[%c0_81, %c0_82] : memref<32x32xf32, #tpu.memory_space<vmem>>, vector<32x32xf32>
    %cst_83 = arith.constant dense<0.000000e+00> : vector<8x32xf32>
    %149 = tpu.matmul %125, %148, %cst_83 {dimension_numbers = #tpu.dot_dimension_numbers<[1], [0], [0], [1], [0, 0, 1, 1], [], []>} : vector<8x32xf32>, vector<32x32xf32>, vector<8x32xf32> -> vector<8x32xf32>
    %c0_84 = arith.constant 0 : index
    %c0_85 = arith.constant 0 : index
    %150 = vector.load %arg17[%c0_84, %c0_85] : memref<32x32xf32, #tpu.memory_space<vmem>>, vector<32x32xf32>
    %cst_86 = arith.constant dense<0.000000e+00> : vector<8x32xf32>
    %151 = tpu.matmul %147, %150, %cst_86 {dimension_numbers = #tpu.dot_dimension_numbers<[1], [0], [0], [1], [0, 0, 1, 1], [], []>} : vector<8x32xf32>, vector<32x32xf32>, vector<8x32xf32> -> vector<8x32xf32>
    %152 = arith.addf %149, %151 : vector<8x32xf32>
    %c0_87 = arith.constant 0 : index
    %c0_88 = arith.constant 0 : index
    %153 = vector.load %arg18[%c0_87, %c0_88] : memref<32x32xf32, #tpu.memory_space<vmem>>, vector<32x32xf32>
    %cst_89 = arith.constant dense<0.000000e+00> : vector<8x32xf32>
    %154 = tpu.matmul %100, %153, %cst_89 {dimension_numbers = #tpu.dot_dimension_numbers<[1], [0], [0], [1], [0, 0, 1, 1], [], []>} : vector<8x32xf32>, vector<32x32xf32>, vector<8x32xf32> -> vector<8x32xf32>
    %155 = arith.addf %152, %154 : vector<8x32xf32>
    %c0_90 = arith.constant 0 : index
    %c0_91 = arith.constant 0 : index
    %156 = vector.load %arg19[%c0_90, %c0_91] : memref<1x32xf32, #tpu.memory_space<vmem>>, vector<1x32xf32>
    %157 = vector.broadcast %156 : vector<1x32xf32> to vector<8x32xf32>
    %158 = arith.addf %155, %157 : vector<8x32xf32>
    %159 = arith.negf %158 : vector<8x32xf32>
    %160 = math.exp %159 : vector<8x32xf32>
    %cst_92 = arith.constant 1.000000e+00 : f32
    %161 = vector.broadcast %cst_92 : f32 to vector<8x32xf32>
    %162 = arith.addf %161, %160 : vector<8x32xf32>
    %163 = arith.divf %161, %162 : vector<8x32xf32>
    %164 = arith.mulf %163, %125 : vector<8x32xf32>
    %cst_93 = arith.constant 1.000000e+00 : f32
    %165 = vector.broadcast %cst_93 : f32 to vector<8x32xf32>
    %166 = arith.subf %165, %163 : vector<8x32xf32>
    %167 = arith.mulf %166, %147 : vector<8x32xf32>
    %168 = arith.addf %164, %167 : vector<8x32xf32>
    %c0_94 = arith.constant 0 : index
    %c0_95 = arith.constant 0 : index
    %169 = vector.load %arg24[%c0_94, %c0_95] : memref<8x32xf32, #tpu.memory_space<vmem>>, vector<8x32xf32>
    tpu.vector_store %arg24[%c0_94, %c0_95], %168 {strides = array<i32>} : memref<8x32xf32, #tpu.memory_space<vmem>>, vector<8x32xf32>,
    %c0_96 = arith.constant 0 : index
    %c0_97 = arith.constant 0 : index
    %170 = vector.load %arg20[%c0_96, %c0_97] : memref<32x32xf32, #tpu.memory_space<vmem>>, vector<32x32xf32>
    %cst_98 = arith.constant dense<0.000000e+00> : vector<8x32xf32>
    %171 = tpu.matmul %100, %170, %cst_98 {dimension_numbers = #tpu.dot_dimension_numbers<[1], [0], [0], [1], [0, 0, 1, 1], [], []>} : vector<8x32xf32>, vector<32x32xf32>, vector<8x32xf32> -> vector<8x32xf32>
    %c0_99 = arith.constant 0 : index
    %c0_100 = arith.constant 0 : index
    %172 = vector.load %arg21[%c0_99, %c0_100] : memref<32x32xf32, #tpu.memory_space<vmem>>, vector<32x32xf32>
    %cst_101 = arith.constant dense<0.000000e+00> : vector<8x32xf32>
    %173 = tpu.matmul %168, %172, %cst_101 {dimension_numbers = #tpu.dot_dimension_numbers<[1], [0], [0], [1], [0, 0, 1, 1], [], []>} : vector<8x32xf32>, vector<32x32xf32>, vector<8x32xf32> -> vector<8x32xf32>
    %174 = arith.addf %171, %173 : vector<8x32xf32>
    %c0_102 = arith.constant 0 : index
    %c0_103 = arith.constant 0 : index
    %175 = vector.load %arg22[%c0_102, %c0_103] : memref<1x32xf32, #tpu.memory_space<vmem>>, vector<1x32xf32>
    %176 = vector.broadcast %175 : vector<1x32xf32> to vector<8x32xf32>
    %177 = arith.addf %174, %176 : vector<8x32xf32>
    %178 = math.tanh %177 : vector<8x32xf32>
    %c0_104 = arith.constant 0 : index
    %c0_105 = arith.constant 0 : index
    %c0_106 = arith.constant 0 : index
    %179 = vector.load %arg23[%c0_104, %c0_105, %c0_106] : memref<1x8x32xf32, #tpu.memory_space<vmem>>, vector<1x8x32xf32>
    %180 = vector.shape_cast %179 : vector<1x8x32xf32> to vector<8x32xf32>
    %181 = vector.shape_cast %178 : vector<8x32xf32> to vector<1x8x32xf32>
    tpu.vector_store %arg23[%c0_104, %c0_105, %c0_106], %181 {strides = array<i32>} : memref<1x8x32xf32, #tpu.memory_space<vmem>>, vector<1x8x32xf32>,
    return
  }
  func.func @transform_0(%arg0: i32) -> (i32, i32, i32) {
    %c0_i32 = arith.constant 0 : i32
    %c0_i32_0 = arith.constant 0 : i32
    %c0_i32_1 = arith.constant 0 : i32
    return %arg0, %c0_i32, %c0_i32_0 : i32, i32, i32
  }
  func.func @transform_1(%arg0: i32) -> (i32, i32, i32) {
    %c0_i32 = arith.constant 0 : i32
    %c0_i32_0 = arith.constant 0 : i32
    %c0_i32_1 = arith.constant 0 : i32
    %c0_i32_2 = arith.constant 0 : i32
    return %c0_i32, %c0_i32_0, %c0_i32_1 : i32, i32, i32
  }
  func.func @transform_2(%arg0: i32) -> (i32, i32, i32) {
    %c0_i32 = arith.constant 0 : i32
    %c0_i32_0 = arith.constant 0 : i32
    %c0_i32_1 = arith.constant 0 : i32
    %c0_i32_2 = arith.constant 0 : i32
    return %c0_i32, %c0_i32_0, %c0_i32_1 : i32, i32, i32
  }
  func.func @transform_3(%arg0: i32) -> (i32, i32, i32) {
    %c0_i32 = arith.constant 0 : i32
    %c0_i32_0 = arith.constant 0 : i32
    %c0_i32_1 = arith.constant 0 : i32
    %c0_i32_2 = arith.constant 0 : i32
    return %c0_i32, %c0_i32_0, %c0_i32_1 : i32, i32, i32
  }
  func.func @transform_4(%arg0: i32) -> (i32, i32, i32) {
    %c0_i32 = arith.constant 0 : i32
    %c0_i32_0 = arith.constant 0 : i32
    %c0_i32_1 = arith.constant 0 : i32
    %c0_i32_2 = arith.constant 0 : i32
    return %c0_i32, %c0_i32_0, %c0_i32_1 : i32, i32, i32
  }
  func.func @transform_5(%arg0: i32) -> (i32, i32) {
    %c0_i32 = arith.constant 0 : i32
    %c0_i32_0 = arith.constant 0 : i32
    %c0_i32_1 = arith.constant 0 : i32
    return %c0_i32, %c0_i32_0 : i32, i32
  }
  func.func @transform_6(%arg0: i32) -> (i32, i32) {
    %c0_i32 = arith.constant 0 : i32
    %c0_i32_0 = arith.constant 0 : i32
    %c0_i32_1 = arith.constant 0 : i32
    return %c0_i32, %c0_i32_0 : i32, i32
  }
  func.func @transform_7(%arg0: i32) -> (i32, i32, i32) {
    %c0_i32 = arith.constant 0 : i32
    %c0_i32_0 = arith.constant 0 : i32
    %c0_i32_1 = arith.constant 0 : i32
    %c0_i32_2 = arith.constant 0 : i32
    return %c0_i32, %c0_i32_0, %c0_i32_1 : i32, i32, i32
  }
  func.func @transform_8(%arg0: i32) -> (i32, i32) {
    %c0_i32 = arith.constant 0 : i32
    %c0_i32_0 = arith.constant 0 : i32
    %c0_i32_1 = arith.constant 0 : i32
    return %c0_i32, %c0_i32_0 : i32, i32
  }
  func.func @transform_9(%arg0: i32) -> (i32, i32) {
    %c0_i32 = arith.constant 0 : i32
    %c0_i32_0 = arith.constant 0 : i32
    %c0_i32_1 = arith.constant 0 : i32
    return %c0_i32, %c0_i32_0 : i32, i32
  }
  func.func @transform_10(%arg0: i32) -> (i32, i32) {
    %c0_i32 = arith.constant 0 : i32
    %c0_i32_0 = arith.constant 0 : i32
    %c0_i32_1 = arith.constant 0 : i32
    return %c0_i32, %c0_i32_0 : i32, i32
  }
  func.func @transform_11(%arg0: i32) -> (i32, i32, i32) {
    %c0_i32 = arith.constant 0 : i32
    %c0_i32_0 = arith.constant 0 : i32
    %c0_i32_1 = arith.constant 0 : i32
    %c0_i32_2 = arith.constant 0 : i32
    return %c0_i32, %c0_i32_0, %c0_i32_1 : i32, i32, i32
  }
  func.func @transform_12(%arg0: i32) -> (i32, i32, i32) {
    %c0_i32 = arith.constant 0 : i32
    %c0_i32_0 = arith.constant 0 : i32
    %c0_i32_1 = arith.constant 0 : i32
    %c0_i32_2 = arith.constant 0 : i32
    return %c0_i32, %c0_i32_0, %c0_i32_1 : i32, i32, i32
  }
  func.func @transform_13(%arg0: i32) -> (i32, i32, i32) {
    %c0_i32 = arith.constant 0 : i32
    %c0_i32_0 = arith.constant 0 : i32
    %c0_i32_1 = arith.constant 0 : i32
    %c0_i32_2 = arith.constant 0 : i32
    return %c0_i32, %c0_i32_0, %c0_i32_1 : i32, i32, i32
  }
  func.func @transform_14(%arg0: i32) -> (i32, i32, i32) {
    %c0_i32 = arith.constant 0 : i32
    %c0_i32_0 = arith.constant 0 : i32
    %c0_i32_1 = arith.constant 0 : i32
    %c0_i32_2 = arith.constant 0 : i32
    return %c0_i32, %c0_i32_0, %c0_i32_1 : i32, i32, i32
  }
  func.func @transform_15(%arg0: i32) -> (i32, i32) {
    %c0_i32 = arith.constant 0 : i32
    %c0_i32_0 = arith.constant 0 : i32
    %c0_i32_1 = arith.constant 0 : i32
    return %c0_i32, %c0_i32_0 : i32, i32
  }
  func.func @transform_16(%arg0: i32) -> (i32, i32) {
    %c0_i32 = arith.constant 0 : i32
    %c0_i32_0 = arith.constant 0 : i32
    %c0_i32_1 = arith.constant 0 : i32
    return %c0_i32, %c0_i32_0 : i32, i32
  }
  func.func @transform_17(%arg0: i32) -> (i32, i32) {
    %c0_i32 = arith.constant 0 : i32
    %c0_i32_0 = arith.constant 0 : i32
    %c0_i32_1 = arith.constant 0 : i32
    return %c0_i32, %c0_i32_0 : i32, i32
  }
  func.func @transform_18(%arg0: i32) -> (i32, i32) {
    %c0_i32 = arith.constant 0 : i32
    %c0_i32_0 = arith.constant 0 : i32
    %c0_i32_1 = arith.constant 0 : i32
    return %c0_i32, %c0_i32_0 : i32, i32
  }
  func.func @transform_19(%arg0: i32) -> (i32, i32) {
    %c0_i32 = arith.constant 0 : i32
    %c0_i32_0 = arith.constant 0 : i32
    %c0_i32_1 = arith.constant 0 : i32
    return %c0_i32, %c0_i32_0 : i32, i32
  }
  func.func @transform_20(%arg0: i32) -> (i32, i32) {
    %c0_i32 = arith.constant 0 : i32
    %c0_i32_0 = arith.constant 0 : i32
    %c0_i32_1 = arith.constant 0 : i32
    return %c0_i32, %c0_i32_0 : i32, i32
  }
  func.func @transform_21(%arg0: i32) -> (i32, i32) {
    %c0_i32 = arith.constant 0 : i32
    %c0_i32_0 = arith.constant 0 : i32
    %c0_i32_1 = arith.constant 0 : i32
    return %c0_i32, %c0_i32_0 : i32, i32
  }
  func.func @transform_22(%arg0: i32) -> (i32, i32, i32) {
    %c0_i32 = arith.constant 0 : i32
    %c0_i32_0 = arith.constant 0 : i32
    %c0_i32_1 = arith.constant 0 : i32
    return %arg0, %c0_i32, %c0_i32_0 : i32, i32, i32
  }
}

</mosaic_0001>

<bundles_post_ra>
// kernel: tpu_custom_call.1
= control target key start
LH: loop header
LB: loop body
LE: loop exit
PB: predicated region body
PF: predicated region fallthrough
CT: control target
= control target key end

     0   :  { %s4461_s0 = inlined_call_operand.vmem [shape: f32[6,8,32], index: 0, kind: input, shape index: {}]   ;;  %s4462_s1 = inlined_call_operand.vmem [shape: f32[8,12,32], index: 1, kind: input, shape index: {}]   ;;  %s4463_s2 = inlined_call_operand.vmem [shape: f32[8,32,12], index: 2, kind: input, shape index: {}]   ;;  %s4464_s3 = inlined_call_operand.vmem [shape: f32[8,8,32], index: 3, kind: input, shape index: {}]   ;;  %s4465_s4 = inlined_call_operand.vmem [shape: f32[8,32,8], index: 4, kind: input, shape index: {}]   ;;  %s4466_s5 = inlined_call_operand.vmem [shape: f32[8,12], index: 5, kind: input, shape index: {}]   ;;  %s4467_s6 = inlined_call_operand.vmem [shape: f32[8,8], index: 6, kind: input, shape index: {}]   ;;  %s4468_s7 = inlined_call_operand.vmem [shape: f32[2,8,32], index: 7, kind: input, shape index: {}]   ;;  %s4469_s8 = inlined_call_operand.vmem [shape: f32[32,32], index: 8, kind: input, shape index: {}]   ;;  %s4470_s9 = inlined_call_operand.vmem [shape: f32[32,32], index: 9, kind: input, shape index: {}]   ;;  %s4471_s10 = inlined_call_operand.vmem [shape: f32[1,32], index: 10, kind: input, shape index: {}]   ;;  %s4472_s11 = inlined_call_operand.vmem [shape: f32[2,32,96], index: 11, kind: input, shape index: {}]   ;;  %s4473_s12 = inlined_call_operand.vmem [shape: f32[2,32,96], index: 12, kind: input, shape index: {}]   ;;  %s4474_s13 = inlined_call_operand.vmem [shape: f32[2,1,96], index: 13, kind: input, shape index: {}]   ;;  %s4475_s14 = inlined_call_operand.vmem [shape: f32[2,1,96], index: 14, kind: input, shape index: {}]   ;;  %s4476_s15 = inlined_call_operand.vmem [shape: f32[32,32], index: 15, kind: input, shape index: {}]   ;;  %s4477_s16 = inlined_call_operand.vmem [shape: f32[32,32], index: 16, kind: input, shape index: {}]   ;;  %s4478_s17 = inlined_call_operand.vmem [shape: f32[32,32], index: 17, kind: input, shape index: {}]   ;;  %s4479_s18 = inlined_call_operand.vmem [shape: f32[1,32], index: 18, kind: input, shape index: {}]   ;;  %s4480_s19 = inlined_call_operand.vmem [shape: f32[32,32], index: 19, kind: input, shape index: {}]   ;;  %s4481_s20 = inlined_call_operand.vmem [shape: f32[32,32], index: 20, kind: input, shape index: {}]   ;;  %s4482_s21 = inlined_call_operand.vmem [shape: f32[1,32], index: 21, kind: input, shape index: {}]   ;;  %s4483_s22 = inlined_call_operand.hbm [shape: f32[6,8,32], index: 22, kind: output, shape index: {}]  }
   0x1   :  { %4502 = sst [smem:[#allocation13_spill]] %s4461_s0 }
   0x2   :  { %4503 = sst [smem:[#allocation14_spill]] %s4462_s1 }
   0x3   :  { %4504 = sst [smem:[#allocation15_spill]] %s4463_s2 }
   0x4   :  { %4505 = sst [smem:[#allocation16_spill]] %s4464_s3 }
   0x5   :  { %4506 = sst [smem:[#allocation17_spill]] %s4465_s4 }
   0x6   :  { %4507 = sst [smem:[#allocation18_spill]] %s4466_s5 }
   0x7   :  { %4508 = sst [smem:[#allocation19_spill]] %s4467_s6 }
   0x8   :  { %4509 = sst [smem:[#allocation20_spill]] %s4468_s7 }
   0x9   :  { %4510 = sst [smem:[#allocation21_spill]] %s4469_s8 }
   0xa   :  { %4511 = sst [smem:[#allocation22_spill]] %s4470_s9 }
   0xb   :  { %27 = vsyncpa [#allocation5], 0 }
   0xc   :  { %29 = vsyncpa [#allocation5 + $0x1], 0  ;;  %s3459_s3 = smov 0   ;;  %s3461_s28 = smov 0  }
   0xd   :  { %s3463_s29 = smov 0   ;;  %s3465_s30 = smov 0  }
   0xe LB: > { %4512 = sst [smem:[#allocation7_spill]] %s3322_s3  ;;  %s3480_s4 = sadd.s32 4294967295, %s3334_s30   ;;  %s3334_s30 = sphi %s3465_s30, %s4541_s30   ;;  %s3330_s29 = sphi %s3463_s29, %s4543_s29   ;;  %s3326_s28 = sphi %s3461_s28, %s4545_s28   ;;  %s3322_s3 = sphi %s3459_s3, %s4544_s3  }
   0xf   : > { %4513 = sst [smem:[#allocation8_spill]] %s3330_s29  ;;  %s2888_s0 = sadd.s32 4294967294, %s3334_s30  }
  0x10   : > { %4514 = sst [smem:[#allocation9_spill]] %s3334_s30  ;;  %s3484_s23 = sadd.s32 1, %s3334_s30  }
  0x11   : > { %4515 = sst [smem:[#allocation10_spill]] %s3484_s23  ;;  %s509_s1 = sadd.s32 1, %s3330_s29 }
  0x12   : > { %s506_s5 = ssub.s32 %s3334_s30, %s3484_s23  ;;  %p519_p0 = scmp.ne.s32.totalorder %s3330_s29, %s3326_s28 }
  0x13   : > { %p507_p1 = scmp.eq.s32.totalorder %s506_s5, 0  ;;  %p520_p2 = scmp.eq.s32.totalorder %s3480_s4, 5 }
  0x14   : > { %p525_p3 = scmp.ne.s32.totalorder %s3326_s28, %s3322_s3  ;;  %p526_p4 = scmp.eq.s32.totalorder %s2888_s0, 5 }
  0x15   : > { %s3495_s24 = scalar_select %p507_p1, %s3330_s29, %s509_s1  }
  0x16   : > { %p3497_p5 = por %p520_p2, %p519_p0  ;;  %p3501_p6 = por %p526_p4, %p525_p3 }
  0x17   : > { %4516 = sst [smem:[#allocation11_spill]] %s3495_s24  ;;  %p2891_p7 = scmp.ge.s32.totalorder %s3334_s30, 1 }
  0x18   : > { %s4518_s25 = scalar_select %p3501_p6, 1, 0 }
  0x19   : > { %p614_p8 = scmp.lt.s32.totalorder %s3334_s30, 7 }
  0x1a   : > { %4519 = sst [smem:[#allocation12_spill]] %s4518_s25 }
  0x1b   : > { %p615_p9 = pnand %p2891_p7, %p614_p8 }
  0x1c   : > { %s4494_s26 = sand.u32 (!%p615_p9), 1, %s3326_s28   ;;  %p675_p10 = scmp.lt.s32.totalorder (!%p615_p9), %s3480_s4, 5 }
  0x1d   : > { %618 = sbr.rel (%p615_p9) target bundleno = 2592 (0xa20), region = 108  ;;  %s3511_s2 = sshll.u32 (!%p615_p9), %s4494_s26, 3 }
  0x1e   : > { %s4520_s24 = sld [smem:[#allocation13_spill]] (!%p615_p9)  ;;  %p2894_p11 = scmp.ne.s32.totalorder (!%p615_p9), %s3480_s4, 0 }
  0x24   : > { %s676_s27 = scalar_select %p675_p10, %s3480_s4, 5 }
  0x25   : > { %682 = sbr.rel (%p2894_p11) target bundleno = 45 (0x2d), region = 112  ;;  %vm683_vm0 = vcmask (!%p2894_p11), 261120   ;;  %s4521_s7 = sld [smem:[#allocation20_spill]] (!%p2894_p11)  ;;  %v3336_v2 = vmov (!%p2894_p11), 0.0  }
  0x26   : > { %s2893_s0 = sshll.u32 %s676_s27, 3  ;;  %684 = vst.msk [vmem:[#allocation2] sm:$0xff] (!%p2894_p11), %vm683_vm0, %v3336_v2 }
  0x27   : > { %s3517_s29 = scalar_lea.vmem %s4520_s24, %s2893_s0 }
  0x2b   : > { %v685_v0 = vld [vmem:[%s4521_s7] sm:$0xff] (!%p2894_p11)  ;;  %v686_v1 = vld [vmem:[%s4521_s7 + $0x8] sm:$0xff] (!%p2894_p11) }
  0x2c   : > { %687 = vst.msk [vmem:[#allocation3] sm:$0xff] %vm683_vm0, %v685_v0  ;;  %688 = vst.msk [vmem:[#allocation3 + $0x8] sm:$0xff] %vm683_vm0, %v686_v1 }
  0x2d PF: > { %s4522_s9 = sld [smem:[#allocation22_spill]]  ;;  %s4523_s8 = sld [smem:[#allocation21_spill]]  ;;  %v4500_v6 = vmov 0.0|0.0   ;;  %vm3338_vm1 = vmmov 0   ;;  %v4498_v14 = vmov 0.0   ;;  %v939_v17 = vld [vmem:[%s4473_s12] sm:$0xff] }
  0x2e   : > { %3106 = vmatprep.subr.bf16.mxu0 %v4500_v6  ;;  %3112 = vmatprep.subr.bf16.mxu1 %v4500_v6  ;;  %v940_v18 = vld [vmem:[%s4473_s12 + $0x8] sm:$0xff]  ;;  %v855_v19 = vld [vmem:[%s4472_s11] sm:$0xff]  ;;  %vm699_vm2 = vcmask 261120   ;;  %v941_v25 = vld [vmem:[%s4473_s12 + $0x10] sm:$0xff]  ;;  %s4495_s3 = smov 64   ;;  %s4497_s0 = smov 96  }
  0x2f   : > { %2993 = vmatprep.mubr.msk.f32.mxu0 %vm3338_vm1, %v4498_v14  ;;  %3004 = vmatprep.mubr.msk.f32.mxu1 %vm3338_vm1, %v4498_v14  ;;  %v856_v20 = vld [vmem:[%s4472_s11 + $0x8] sm:$0xff]  ;;  %v690_v21 = vld [vmem:[#allocation2] sm:$0xff]  ;;  %v3125_v24 = vpack.c.bf16 %v940_v18, %v939_v17  ;;  %v942_v26 = vld [vmem:[%s4473_s12 + $0x18] sm:$0xff]  ;;  %s4524_s30 = smov 64   ;;  %s4525_s24 = sld [smem:[#allocation18_spill]]  ;;  %vm1505_vm3 = vcmask 97280  }
  0x30   : > { %v3119_v22 = vpack.c.bf16 %v856_v20, %v855_v19  ;;  %v689_v23 = vld [vmem:[%s3517_s29] sm:$0xff]  ;;  %v3128_v27 = vpack.c.bf16 %v942_v26, %v941_v25  ;;  %v857_v29 = vld [vmem:[%s4472_s11 + $0x10] sm:$0xff]  ;;  %v858_v30 = vld [vmem:[%s4472_s11 + $0x18] sm:$0xff]  ;;  %s4526_s1 = sld [smem:[#allocation19_spill]]  ;;  %s4527_s25 = sld [smem:[#allocation15_spill]]  ;;  %vm2008_vm4 = vcmask 64512  }
  0x31   : > { %v3122_v31 = vpack.c.bf16 %v858_v30, %v857_v29  ;;  %v2897_v34 = vld [vmem:[%s4471_s10] ss:$0 sm:$0xff]  ;;  %v2911_v57 = vld [vmem:[%s4473_s12 + $0x28] sm:$0xff]  ;;  %v2912_v58 = vld [vmem:[%s4473_s12 + $0x30] sm:$0xff]  ;;  %s4528_s7 = sld [smem:[#allocation17_spill]]  ;;  %vm1643_vm5 = vcmask 1041409  }
  0x32   : > { %v2900_v39 = vld [vmem:[%s4475_s14] ss:$0 sm:$0xff]  ;;  %v2913_v60 = vld [vmem:[%s4473_s12 + $0x38] sm:$0xff]  ;;  %v2904_v62 = vld [vmem:[%s4472_s11 + $0x28] sm:$0xff]  ;;  %vm1646_vm6 = vcmask 1042434   ;;  %vm1649_vm7 = vcmask 1043459  }
  0x33   : > { %v695_v3 = vld [vmem:[%s4522_s9] sm:$0xff]  ;;  %v696_v4 = vld [vmem:[%s4522_s9 + $0x8] sm:$0xff]  ;;  %v697_v9 = vld [vmem:[%s4522_s9 + $0x10] sm:$0xff]  ;;  %v3140_v1 = vpack.c.bf16 %v2913_v60, %v2912_v58  ;;  %vm1652_vm8 = vcmask 1044484   ;;  %vm1655_vm9 = vcmask 1045509   ;;  %vm1658_vm10 = vcmask 1046534  }
  0x34   : > { %v691_v5 = vld [vmem:[%s4523_s8] sm:$0xff]  ;;  %v3107_v7 = vpack.c.bf16 %v696_v4, %v695_v3  ;;  %v692_v8 = vld [vmem:[%s4523_s8 + $0x8] sm:$0xff]  ;;  %v698_v10 = vld [vmem:[%s4522_s9 + $0x18] sm:$0xff]  ;;  %vm1661_vm11 = vcmask 1047559   ;;  %s4531_s5 = smov 96   ;;  %s4532_s9 = sld [smem:[#allocation16_spill]] }
  0x35   : > { %v3113_v11 = vpack.c.bf16 %v692_v8, %v691_v5  ;;  %v693_v12 = vld [vmem:[%s4523_s8 + $0x10] sm:$0xff]  ;;  %v694_v13 = vld [vmem:[%s4523_s8 + $0x18] sm:$0xff]  ;;  %v3110_v15 = vpack.c.bf16 %v698_v10, %v697_v9  ;;  %v3588_v28 = vld [vmem:[#allocation3] sm:$0xff]  ;;  %vm1863_vm12 = vcmask 257024   ;;  %s4535_s27 = scalar_lea.vmem [#allocation4], %s3511_s2  ;;  %s4537_s29 = sand.u32 1, %s3326_s28  }
  0x36   : > { %3108 = vmatpush3.bf16.msra.mxu0 %v3107_v7  ;;  %v3116_v16 = vpack.c.bf16 %v694_v13, %v693_v12  ;;  %v2898_v43 = vld [vmem:[%s4474_s13] ss:$0 sm:$0xff]  ;;  %v2905_v63 = vld [vmem:[%s4472_s11 + $0x30] sm:$0xff]  ;;  %v2906_v0 = vld [vmem:[%s4472_s11 + $0x38] sm:$0xff]  ;;  %s2816_s23 = scalar_lea.sflag [#allocation5], %s4537_s29 }
  0x37   : > { %3114 = vmatpush3.bf16.msra.mxu1 %v3113_v11  ;;  %3109 = vmatprep.subr.bf16.mxu0 %v4500_v6  ;;  %v2910_v56 = vld [vmem:[%s4473_s12 + $0x20] sm:$0xff]  ;;  %v3134_v4 = vpack.c.bf16 %v2906_v0, %v2905_v63  ;;  %v1058_v5 = vld [vmem:[#allocation3 + $0x8] sm:$0xff] }
  0x38   : > { %3115 = vmatprep.subr.bf16.mxu1 %v4500_v6  ;;  %v3137_v59 = vpack.c.bf16 %v2911_v57, %v2910_v56  ;;  %v2903_v61 = vld [vmem:[%s4472_s11 + $0x20] sm:$0xff] }
  0x39   : > { %v3131_v2 = vpack.c.bf16 %v2904_v62, %v2903_v61  ;;  %v2915_v13 = vld [vmem:[%s4475_s14 + $0x1] ss:$0 sm:$0xff] }
  0x3a   : > { %3111 = vmatpush3.bf16.msra.mxu0 %v3110_v15  ;;  %v2908_v19 = vld [vmem:[%s4474_s13 + $0x1] ss:$0 sm:$0xff] }
  0x3b   : > { %3117 = vmatpush3.bf16.msra.mxu1 %v3116_v16  ;;  %3118 = vmatprep.subr.bf16.mxu0 %v4500_v6  ;;  %v3681_v63 = vld [vmem:[%s4525_s24] sm:$0xff]  ;;  %s2927_s24 = sshll.u32 %s3480_s4, 7  ;;  %s3343_s4 = smov [#allocation4]  }
  0x3c   : > { %3124 = vmatprep.subr.bf16.mxu1 %v4500_v6  ;;  %v3686_v0 = vld [vmem:[%s4526_s1] sm:$0xff]  ;;  %s4414_s8 = scalar_lea.hbm %s4483_s22, %s2927_s24 }
  0x3d   : > { %2994 = vmatmul.mubr.msk.f32.vlgmr.msra.gmra.mrb[0].mxu0 %vm699_vm2, %v690_v21 }
  0x3e   : > { %3005 = vmatmul.mubr.msk.f32.vlgmr.msra.gmra.mrb[0].mxu1 %vm699_vm2, %v689_v23  ;;  %3120 = vmatpush3.bf16.msra.mxu0 %v3119_v22 }
  0x3f   : > { %3126 = vmatpush3.bf16.msra.mxu1 %v3125_v24  ;;  %3026 = vmatprep.mubr.msk.f32.mxu1 %vm3338_vm1, %v4498_v14 }
  0x40   : > { %3127 = vmatprep.subr.bf16.mxu1 %v4500_v6  ;;  %3121 = vmatprep.subr.bf16.mxu0 %v4500_v6 }
  0x41   : > { %3015 = vmatprep.mubr.msk.f32.mxu0 %vm3338_vm1, %v4498_v14 }
  0x42   : > { %3123 = vmatpush3.bf16.msra.mxu0 %v3122_v31 }
  0x43   : > { %3129 = vmatpush3.bf16.msra.mxu1 %v3128_v27  ;;  %3130 = vmatprep.subr.bf16.mxu0 %v4500_v6 }
  0x44   : > { %3136 = vmatprep.subr.bf16.mxu1 %v4500_v6 }
  0x46   : > { %3027 = vmatmul.mubr.msk.f32.vlgmr.msra.gmra.mrb[2].mxu1 %vm699_vm2, %v3588_v28 }
  0x47   : > { %3048 = vmatprep.mubr.msk.f32.mxu1 %vm3338_vm1, %v4498_v14  ;;  %3138 = vmatpush3.bf16.msra.mxu1 %v3137_v59 }
  0x48   : > { %3139 = vmatprep.subr.bf16.mxu1 %v4500_v6 }
  0x4b   : > { %3141 = vmatpush3.bf16.msra.mxu1 %v3140_v1  ;;  %v1285_v1 = vld [vmem:[%s4527_s25 + $0x28] sm:$0xff] }
  0x4c   : > { %3148 = vmatprep.subr.bf16.mxu1 %v4500_v6 }
  0x4e   : > { %3049 = vmatmul.mubr.msk.f32.vlgmr.msra.gmra.mrb[4].mxu1 %vm699_vm2, %v1058_v5 }
  0x4f   : > { %3070 = vmatprep.mubr.msk.f32.mxu1 %vm3338_vm1, %v4498_v14 }
 0x110   : > { %v769_v32 = vpop.f32.mrb[0].mxu0 }
 0x111   : > { %v842_v33 = vpop.f32.mrb[0].mxu1  ;;  %v2995_v35 = vpop.f32.mrb[1].mxu0 }
 0x112   : > { %v843_v36 = vadd.f32 %v842_v33, %v769_v32  ;;  %v3006_v37 = vpop.f32.mrb[1].mxu1  ;;  %v1313_v33 = vlaneseq }
 0x114   : > { %v853_v38 = vadd.f32 %v2897_v34, %v843_v36  ;;  %v1314_v34 = vshrl.u32 %v1313_v33, 7 }
 0x116   : > { %3016 = vmatmul.mubr.msk.f32.vlgmr.msra.gmra.mrb[2].mxu0 %vm699_vm2, %v853_v38 }
 0x117   : > { %3037 = vmatprep.mubr.msk.f32.mxu0 %vm3338_vm1, %v4498_v14  ;;  %3132 = vmatpush3.bf16.msra.mxu0 %v3131_v2  ;;  %v1948_v2 = vld [vmem:[%s4528_s7 + $0x28] sm:$0xff] }
 0x118   : > { %3133 = vmatprep.subr.bf16.mxu0 %v4500_v6 }
 0x119   : > { %v1019_v40 = vpop.f32.mrb[2].mxu1 }
 0x11a   : > { %v1020_v41 = vadd.f32 %v2900_v39, %v1019_v40  ;;  %v3028_v42 = vpop.f32.mrb[3].mxu1  ;;  %v1335_v40 = vsub.s32 1, %v1314_v34 }
 0x11b   : > { %3135 = vmatpush3.bf16.msra.mxu0 %v3134_v4  ;;  %v1947_v4 = vld [vmem:[%s4528_s7 + $0x20] sm:$0xff] }
 0x11c   : > { %1031 = vrot.lane.b32.xlu0 %v1020_v41, %s4495_s3  ;;  %3142 = vmatprep.subr.bf16.mxu0 %v4500_v6 }
 0x121   : > { %v1226_v15 = vpop.f32.mrb[4].mxu1 }
 0x122   : > { %v1227_v16 = vadd.f32 %v2915_v13, %v1226_v15  ;;  %v3050_v17 = vpop.f32.mrb[5].mxu1 }
 0x123   : > { %v2115_v17 = vrot.slane %v3686_v0, 2 }
 0x18e   : > { %v1032_v51 = vpop.permute.xlu0 %1031 }
 0x1e9   : > { %v935_v44 = vpop.f32.mrb[2].mxu0 }
 0x1ea   : > { %v936_v45 = vadd.f32 %v2898_v43, %v935_v44  ;;  %v3017_v46 = vpop.f32.mrb[3].mxu0  ;;  %v1355_v43 = vsub.s32 2, %v1314_v34  ;;  %v3668_v44 = vsub.s32 0, %v1314_v34 }
 0x1ec   : > { %v1023_v47 = vadd.f32 %v1020_v41, %v936_v45 }
 0x1ee   : > { %v2902_v48 = vmul.f32 -1.442695, %v1023_v47  ;;  %v1375_v47 = vsub.s32 3, %v1314_v34 }
 0x1f0   : > { %3218 = vpow2.f32 %v2902_v48 }
 0x1fa   : > { %v3219_v49 = vpop.eup %3218 }
 0x1fb   : > { %v1027_v50 = vadd.f32 1.0, %v3219_v49  ;;  %v1395_v49 = vsub.s32 4, %v1314_v34 }
 0x1fd   : > { %3220 = vrcp.f32 %v1027_v50 }
 0x207   : > { %v3221_v52 = vpop.eup %3220 }
 0x208   : > { %v1034_v53 = vmul.f32 %v3221_v52, %v1032_v51  ;;  %v1041_v8 = vsub.f32 1.0, %v3221_v52  ;;  %v1415_v51 = vsub.s32 5, %v1314_v34 }
 0x20a   : > { %1036 = vrot.lane.b32.xlu0 %v1034_v53, %s4495_s3  ;;  %s3342_s3 = smov 32   ;;  %v1435_v53 = vsub.s32 6, %v1314_v34 }
 0x27c   : > { %v1037_v54 = vpop.permute.xlu0 %1036 }
 0x27d   : > { %v1039_v55 = vadd.f32 %v1037_v54, %v936_v45 }
 0x27f   : > { %3222 = vtanh.f32 %v1039_v55  ;;  %v1455_v55 = vsub.s32 7, %v1314_v34 }
 0x289   : > { %v3223_v3 = vpop.eup %3222 }
 0x28a   : > { %1043 = vrot.lane.b32.xlu1 %v3223_v3, %s4497_s0  ;;  %v1284_v3 = vld [vmem:[%s4527_s25 + $0x20] sm:$0xff] }
 0x28e   : > { %1047 = vrot.lane.b32.xlu1 %v3588_v28, %s3342_s3 }
 0x292   : > { %1238 = vrot.lane.b32.xlu1 %v1227_v16, %s4524_s30 }
 0x2fc   : > { %v1044_v7 = vpop.permute.xlu1 %1043 }
 0x2fd   : > { %v1046_v10 = vmul.f32 %v1044_v7, %v1041_v8  ;;  %v1952_v7 = vld [vmem:[%s4528_s7 + $0x48] sm:$0xff]  ;;  %v1288_v8 = vld [vmem:[%s4527_s25 + $0x40] sm:$0xff] }
 0x300   : > { %v1048_v9 = vpop.permute.xlu1 %1047 }
 0x301   : > { %v1050_v11 = vmul.f32 %v3221_v52, %v1048_v9  ;;  %v1611_v9 = vrot.slane %v3681_v63, 1 }
 0x303   : > { %v1051_v12 = vadd.f32 %v1050_v11, %v1046_v10  ;;  %v2114_v10 = vrot.slane %v3686_v0, 1  ;;  %v1951_v11 = vld [vmem:[%s4528_s7 + $0x40] sm:$0xff] }
 0x304   : > { %v1239_v27 = vpop.permute.xlu1 %1238 }
 0x305   : > { %1053 = vrot.lane.b32.xlu0 %v1051_v12, %s4497_s0  ;;  %v1281_v12 = vld [vmem:[%s4527_s25 + $0x8] sm:$0xff] }
 0x377   : > { %v1054_v18 = vpop.permute.xlu0 %1053 }
 0x378   : > { %1056 = vst.msk [vmem:[#allocation3] sm:$0xff] %vm699_vm2, %v1054_v18  ;;  %3038 = vmatmul.mubr.msk.f32.vlgmr.msra.gmra.mrb[4].mxu0 %vm699_vm2, %v1054_v18  ;;  %v1613_v18 = vrot.slane %v3681_v63, 3 }
 0x379   : > { %3059 = vmatprep.mubr.msk.f32.mxu0 %vm3338_vm1, %v4498_v14 }
 0x44b   : > { %v1140_v20 = vpop.f32.mrb[4].mxu0 }
 0x44c   : > { %v1141_v21 = vadd.f32 %v2908_v19, %v1140_v20  ;;  %v3039_v22 = vpop.f32.mrb[5].mxu0  ;;  %v2116_v19 = vrot.slane %v3686_v0, 3  ;;  %v1944_v20 = vld [vmem:[%s4528_s7 + $0x8] sm:$0xff] }
 0x44d   : > { %v1614_v22 = vrot.slane %v3681_v63, 4 }
 0x44e   : > { %v1230_v23 = vadd.f32 %v1227_v16, %v1141_v21  ;;  %v1612_v16 = vrot.slane %v3681_v63, 2 }
 0x450   : > { %v2917_v24 = vmul.f32 -1.442695, %v1230_v23  ;;  %v2117_v23 = vrot.slane %v3686_v0, 4 }
 0x452   : > { %3224 = vpow2.f32 %v2917_v24  ;;  %v2118_v24 = vrot.slane %v3686_v0, 5 }
 0x45c   : > { %v3225_v25 = vpop.eup %3224 }
 0x45d   : > { %v1234_v26 = vadd.f32 1.0, %v3225_v25  ;;  %v2119_v25 = vrot.slane %v3686_v0, 6 }
 0x45f   : > { %3226 = vrcp.f32 %v1234_v26 }
 0x469   : > { %v3227_v28 = vpop.eup %3226 }
 0x46a   : > { %v1241_v29 = vmul.f32 %v3227_v28, %v1239_v27  ;;  %v1248_v36 = vsub.f32 1.0, %v3227_v28 }
 0x46c   : > { %1243 = vrot.lane.b32.xlu0 %v1241_v29, %s4524_s30  ;;  %v1286_v29 = vld [vmem:[%s4527_s25 + $0x30] sm:$0xff]  ;;  %s4536_s30 = smov %s4535_s27 }
 0x470   : > { %1254 = vrot.lane.b32.xlu0 %v1058_v5, %s3342_s3  ;;  %v1289_v5 = vld [vmem:[%s4527_s25 + $0x48] sm:$0xff]  ;;  %s2829_s3 = sshll.u32 %s4535_s27, 4  ;;  %s3276_s27 = sshll.u32 %s3343_s4, 4  ;;  %s4416_s3 = int_to_ptr.vmem [resolvable:$true] %s2829_s3  ;;  %s3277_s27 = int_to_ptr.vmem [resolvable:$false] %s3276_s27 }
 0x471   : > { %s3272_s26 = scalar_lea.vmem %s4416_s3, 128  ;;  %s3278_s24 = scalar_lea.vmem %s3277_s27, 256 }
 0x472   : > { %p3273_p12 = scmp.ne.s32.totalorder %s4416_s3, %s3272_s26  ;;  %p3279_p1 = scmp.lt.s32.totalorder %s4416_s3, %s3277_s27 }
 0x473   : > { %p3280_p2 = scmp.lt.s32.totalorder %s3278_s24, %s3272_s26 }
 0x474   : > { %p3274_p13 = pnand %p3273_p12, %p3497_p5 }
 0x475   : > { %p3281_p3 = por %p3280_p2, %p3279_p1 }
 0x476   : > { %p3275_p0 = pneg %p3274_p13 }
 0x478   : > { %p3282_p4 = pnand %p3281_p3, %p3275_p0 }
 0x4de   : > { %v1244_v30 = vpop.permute.xlu0 %1243 }
 0x4df   : > { %v1246_v31 = vadd.f32 %v1244_v30, %v1141_v21  ;;  %v1280_v21 = vld [vmem:[%s4527_s25] sm:$0xff]  ;;  %v1949_v30 = vld [vmem:[%s4528_s7 + $0x30] sm:$0xff] }
 0x4e1   : > { %3228 = vtanh.f32 %v1246_v31  ;;  %v2120_v31 = vrot.slane %v3686_v0, 7 }
 0x4e2   : > { %v1255_v35 = vpop.permute.xlu0 %1254 }
 0x4e3   : > { %v1257_v38 = vmul.f32 %v3227_v28, %v1255_v35  ;;  %v1943_v28 = vld [vmem:[%s4528_s7] sm:$0xff] }
 0x4eb   : > { %v3229_v32 = vpop.eup %3228 }
 0x4ec   : > { %1250 = vrot.lane.b32.xlu1 %v3229_v32, %s4497_s0  ;;  %v1615_v32 = vrot.slane %v3681_v63, 5 }
 0x55e   : > { %v1251_v37 = vpop.permute.xlu1 %1250 }
 0x55f   : > { %v1253_v39 = vmul.f32 %v1251_v37, %v1248_v36 }
 0x561   : > { %v3665_v41 = vadd.f32 %v1257_v38, %v1253_v39 }
 0x563   : > { %v1336_v42 = vrot.slane %v3665_v41, %v1335_v40  ;;  %v1356_v45 = vrot.slane %v3665_v41, %v1355_v43  ;;  %v1316_v46 = vrot.slane %v3665_v41, %v3668_v44  ;;  %v1376_v48 = vrot.slane %v3665_v41, %v1375_v47 }
 0x564   : > { %v1396_v50 = vrot.slane %v3665_v41, %v1395_v49  ;;  %v1416_v52 = vrot.slane %v3665_v41, %v1415_v51  ;;  %v1436_v54 = vrot.slane %v3665_v41, %v1435_v53  ;;  %v1456_v56 = vrot.slane %v3665_v41, %v1455_v55  ;;  %v1290_v51 = vld [vmem:[%s4527_s25 + $0x50] sm:$0xff] }
 0x565   : > { %1343 = vbcast.lane.b32.xlu0 %v1336_v42, 296  ;;  %1339 = vbcast.lane.b32.xlu1 %v1336_v42, 288 }
 0x569   : > { %1363 = vbcast.lane.b32.xlu0 %v1356_v45, 296  ;;  %1359 = vbcast.lane.b32.xlu1 %v1356_v45, 288 }
 0x56d   : > { %1323 = vbcast.lane.b32.xlu0 %v1316_v46, 296  ;;  %1319 = vbcast.lane.b32.xlu1 %v1316_v46, 288 }
 0x571   : > { %1379 = vbcast.lane.b32.xlu0 %v1376_v48, 288  ;;  %1347 = vbcast.lane.b32.xlu1 %v1336_v42, 304 }
 0x575   : > { %1367 = vbcast.lane.b32.xlu0 %v1356_v45, 304  ;;  %1383 = vbcast.lane.b32.xlu1 %v1376_v48, 296 }
 0x579   : > { %1403 = vbcast.lane.b32.xlu0 %v1396_v50, 296  ;;  %1399 = vbcast.lane.b32.xlu1 %v1396_v50, 288 }
 0x57d   : > { %1351 = vbcast.lane.b32.xlu0 %v1336_v42, 312  ;;  %1327 = vbcast.lane.b32.xlu1 %v1316_v46, 304 }
 0x581   : > { %1419 = vbcast.lane.b32.xlu0 %v1416_v52, 288  ;;  %1387 = vbcast.lane.b32.xlu1 %v1376_v48, 304 }
 0x585   : > { %1371 = vbcast.lane.b32.xlu0 %v1356_v45, 312  ;;  %1423 = vbcast.lane.b32.xlu1 %v1416_v52, 296 }
 0x589   : > { %1439 = vbcast.lane.b32.xlu0 %v1436_v54, 288  ;;  %1407 = vbcast.lane.b32.xlu1 %v1396_v50, 304 }
 0x58d   : > { %1331 = vbcast.lane.b32.xlu0 %v1316_v46, 312  ;;  %1443 = vbcast.lane.b32.xlu1 %v1436_v54, 296 }
 0x591   : > { %1427 = vbcast.lane.b32.xlu0 %v1416_v52, 304  ;;  %1391 = vbcast.lane.b32.xlu1 %v1376_v48, 312 }
 0x595   : > { %1463 = vbcast.lane.b32.xlu0 %v1456_v56, 296  ;;  %1459 = vbcast.lane.b32.xlu1 %v1456_v56, 288 }
 0x599   : > { %1447 = vbcast.lane.b32.xlu0 %v1436_v54, 304  ;;  %1411 = vbcast.lane.b32.xlu1 %v1396_v50, 312 }
 0x59d   : > { %1467 = vbcast.lane.b32.xlu0 %v1456_v56, 304  ;;  %1431 = vbcast.lane.b32.xlu1 %v1416_v52, 312  ;;  %v1953_v52 = vld [vmem:[%s4528_s7 + $0x50] sm:$0xff] }
 0x5a1   : > { %1471 = vbcast.lane.b32.xlu0 %v1456_v56, 312  ;;  %1451 = vbcast.lane.b32.xlu1 %v1436_v54, 312  ;;  %v1617_v54 = vrot.slane %v3681_v63, 7 }
 0x5d7   : > { %v1344_v57 = vpop.permute.xlu0 %1343  ;;  %v1340_v58 = vpop.permute.xlu1 %1339 }
 0x5d8   : > { %v1478_v26 = vmul.f32 %v1344_v57, %v1285_v1  ;;  %v1981_v27 = vmul.f32 %v1948_v2, %v1344_v57  ;;  %v1477_v33 = vmul.f32 %v1340_v58, %v1284_v3  ;;  %v1980_v34 = vmul.f32 %v1947_v4, %v1340_v58 }
 0x5da   : > { %v1520_v49 = vsel %vm1505_vm3, %v1478_v26, 0.0  ;;  %v2023_v50 = vsel %vm2008_vm4, %v1981_v27, 0.0  ;;  %v1519_v55 = vsel %vm1505_vm3, %v1477_v33, 0.0  ;;  %v2022_v56 = vsel %vm2008_vm4, %v1980_v34, 0.0 }
 0x5db   : > { %v1364_v59 = vpop.permute.xlu0 %1363  ;;  %v1360_v60 = vpop.permute.xlu1 %1359  ;;  %v2024_v33 = vadd.f32 %v2023_v50, %v2022_v56 }
 0x5dc   : > { %v1482_v35 = vmul.f32 %v1364_v59, %v1289_v5  ;;  %v1985_v36 = vmul.f32 %v1952_v7, %v1364_v59  ;;  %v1481_v37 = vmul.f32 %v1360_v60, %v1288_v8  ;;  %v1984_v38 = vmul.f32 %v1951_v11, %v1360_v60  ;;  %v1293_v59 = vld [vmem:[%s4527_s25 + $0x68] sm:$0xff]  ;;  %v1292_v8 = vld [vmem:[%s4527_s25 + $0x60] sm:$0xff] }
 0x5dd   : > { %v1956_v60 = vld [vmem:[%s4528_s7 + $0x68] sm:$0xff]  ;;  %v1955_v11 = vld [vmem:[%s4528_s7 + $0x60] sm:$0xff] }
 0x5de   : > { %v1533_v57 = vsel %vm1505_vm3, %v1482_v35, 0.0  ;;  %v2036_v58 = vsel %vm2008_vm4, %v1985_v36, 0.0 }
 0x5df   : > { %v1324_v61 = vpop.permute.xlu0 %1323  ;;  %v1320_v62 = vpop.permute.xlu1 %1319 }
 0x5e0   : > { %v1474_v39 = vmul.f32 %v1324_v61, %v1281_v12  ;;  %v1977_v40 = vmul.f32 %v1944_v20, %v1324_v61  ;;  %v1473_v45 = vmul.f32 %v1320_v62, %v1280_v21  ;;  %v1976_v46 = vmul.f32 %v1943_v28, %v1320_v62  ;;  %v1287_v28 = vld [vmem:[%s4527_s25 + $0x38] sm:$0xff] }
 0x5e1   : > { %v1532_v61 = vsel %vm1505_vm3, %v1481_v37, 0.0  ;;  %v2035_v62 = vsel %vm2008_vm4, %v1984_v38, 0.0 }
 0x5e2   : > { %v1507_v1 = vsel %vm1505_vm3, %v1474_v39, 0.0  ;;  %v2010_v2 = vsel %vm2008_vm4, %v1977_v40, 0.0  ;;  %v1506_v5 = vsel %vm1505_vm3, %v1473_v45, 0.0  ;;  %v2009_v7 = vsel %vm2008_vm4, %v1976_v46, 0.0  ;;  %v1297_v40 = vld [vmem:[%s4527_s25 + $0x88] sm:$0xff] }
 0x5e3   : > { %v3717_v13 = vpop.permute.xlu0 %1379  ;;  %v1348_v15 = vpop.permute.xlu1 %1347  ;;  %v1534_v34 = vadd.f32 %v1533_v57, %v1532_v61  ;;  %v2037_v35 = vadd.f32 %v2036_v58, %v2035_v62  ;;  %v3784_v36 = vadd.f32 %v1507_v1, %v1506_v5  ;;  %v3786_v37 = vadd.f32 %v2010_v2, %v2009_v7  ;;  %v1282_v57 = vld [vmem:[%s4527_s25 + $0x10] sm:$0xff] }
 0x5e4   : > { %v1479_v47 = vmul.f32 %v1348_v15, %v1286_v29  ;;  %v1982_v48 = vmul.f32 %v1949_v30, %v1348_v15  ;;  %v1950_v29 = vld [vmem:[%s4528_s7 + $0x38] sm:$0xff]  ;;  %v1521_v30 = vadd.f32 %v1520_v49, %v1519_v55  ;;  %v1485_v38 = vmul.f32 %v3717_v13, %v1292_v8  ;;  %v1945_v58 = vld [vmem:[%s4528_s7 + $0x10] sm:$0xff] }
 0x5e5   : > { %v1988_v39 = vmul.f32 %v1955_v11, %v3717_v13  ;;  %v1959_v13 = vld [vmem:[%s4528_s7 + $0x80] sm:$0xff] }
 0x5e6   : > { %v1522_v12 = vsel %vm1505_vm3, %v1479_v47, 0.0  ;;  %v2025_v15 = vsel %vm2008_vm4, %v1982_v48, 0.0  ;;  %v1296_v48 = vld [vmem:[%s4527_s25 + $0x80] sm:$0xff] }
 0x5e7   : > { %v1368_v42 = vpop.permute.xlu0 %1367  ;;  %v1384_v43 = vpop.permute.xlu1 %1383  ;;  %v1523_v46 = vadd.f32 %v1522_v12, %v1521_v30  ;;  %v2026_v47 = vadd.f32 %v2025_v15, %v2024_v33  ;;  %v1545_v12 = vsel %vm1505_vm3, %v1485_v38, 0.0  ;;  %v2048_v15 = vsel %vm2008_vm4, %v1988_v39, 0.0 }
 0x5e8   : > { %v1483_v20 = vmul.f32 %v1368_v42, %v1290_v51  ;;  %v1986_v21 = vmul.f32 %v1953_v52, %v1368_v42  ;;  %v1486_v26 = vmul.f32 %v1384_v43, %v1293_v59  ;;  %v1989_v27 = vmul.f32 %v1956_v60, %v1384_v43  ;;  %v1960_v42 = vld [vmem:[%s4528_s7 + $0x88] sm:$0xff] }
 0x5ea   : > { %v1535_v51 = vsel %vm1505_vm3, %v1483_v20, 0.0  ;;  %v2038_v52 = vsel %vm2008_vm4, %v1986_v21, 0.0  ;;  %v1546_v55 = vsel %vm1505_vm3, %v1486_v26, 0.0  ;;  %v2049_v56 = vsel %vm2008_vm4, %v1989_v27, 0.0 }
 0x5eb   : > { %v1404_v3 = vpop.permute.xlu0 %1403  ;;  %v1400_v4 = vpop.permute.xlu1 %1399  ;;  %v1536_v26 = vadd.f32 %v1535_v51, %v1534_v34  ;;  %v2039_v27 = vadd.f32 %v2038_v52, %v2037_v35  ;;  %v3822_v30 = vadd.f32 %v1546_v55, %v1545_v12  ;;  %v3824_v33 = vadd.f32 %v2049_v56, %v2048_v15  ;;  %v1300_v34 = vld [vmem:[%s4527_s25 + $0xa0] sm:$0xff] }
 0x5ec   : > { %v1490_v59 = vmul.f32 %v1404_v3, %v1297_v40  ;;  %v1993_v60 = vmul.f32 %v1960_v42, %v1404_v3  ;;  %v1489_v1 = vmul.f32 %v1400_v4, %v1296_v48  ;;  %v1992_v2 = vmul.f32 %v1959_v13, %v1400_v4  ;;  %v1954_v4 = vld [vmem:[%s4528_s7 + $0x58] sm:$0xff]  ;;  %v1963_v35 = vld [vmem:[%s4528_s7 + $0xa0] sm:$0xff] }
 0x5ee   : > { %v1559_v38 = vsel %vm1505_vm3, %v1490_v59, 0.0  ;;  %v2062_v39 = vsel %vm2008_vm4, %v1993_v60, 0.0  ;;  %v1558_v40 = vsel %vm1505_vm3, %v1489_v1, 0.0  ;;  %v2061_v42 = vsel %vm2008_vm4, %v1992_v2, 0.0  ;;  %v1301_v59 = vld [vmem:[%s4527_s25 + $0xa8] sm:$0xff] }
 0x5ef   : > { %v1352_v43 = vpop.permute.xlu0 %1351  ;;  %v1328_v45 = vpop.permute.xlu1 %1327  ;;  %v1964_v60 = vld [vmem:[%s4528_s7 + $0xa8] sm:$0xff] }
 0x5f0   : > { %v1480_v49 = vmul.f32 %v1352_v43, %v1287_v28  ;;  %v1983_v50 = vmul.f32 %v1950_v29, %v1352_v43  ;;  %v1475_v20 = vmul.f32 %v1328_v45, %v1282_v57  ;;  %v1978_v21 = vmul.f32 %v1945_v58, %v1328_v45  ;;  %v1291_v29 = vld [vmem:[%s4527_s25 + $0x58] sm:$0xff] }
 0x5f2   : > { %v1524_v61 = vsel %vm1505_vm3, %v1480_v49, 0.0  ;;  %v2027_v62 = vsel %vm2008_vm4, %v1983_v50, 0.0  ;;  %v1509_v49 = vsel %vm1505_vm3, %v1475_v20, 0.0  ;;  %v2012_v50 = vsel %vm2008_vm4, %v1978_v21, 0.0 }
 0x5f3   : > { %v1525_v5 = vadd.f32 %v1524_v61, %v1523_v46  ;;  %v2028_v7 = vadd.f32 %v2027_v62, %v2026_v47  ;;  %v1420_v8 = vpop.permute.xlu0 %1419  ;;  %v1388_v11 = vpop.permute.xlu1 %1387  ;;  %v1294_v46 = vld [vmem:[%s4527_s25 + $0x70] sm:$0xff]  ;;  %v3852_v21 = vadd.f32 %v1559_v38, %v1558_v40  ;;  %v2013_v38 = vadd.f32 %v2012_v50, %v3786_v37 }
 0x5f4   : > { %v1957_v47 = vld [vmem:[%s4528_s7 + $0x70] sm:$0xff]  ;;  %v1493_v57 = vmul.f32 %v1420_v8, %v1300_v34  ;;  %v1996_v58 = vmul.f32 %v1963_v35, %v1420_v8  ;;  %v1487_v61 = vmul.f32 %v1388_v11, %v1294_v46  ;;  %v1283_v46 = vld [vmem:[%s4527_s25 + $0x18] sm:$0xff] }
 0x5f5   : > { %v1526_v28 = vrot.slane %v1525_v5, 4  ;;  %v2029_v3 = vrot.slane %v2028_v7, 4  ;;  %v1990_v62 = vmul.f32 %v1957_v47, %v1388_v11 }
 0x5f6   : > { %v2074_v40 = vsel %vm2008_vm4, %v1996_v58, 0.0 }
 0x5f7   : > { %v1527_v43 = vadd.f32 %v1526_v28, %v1525_v5  ;;  %v2030_v45 = vadd.f32 %v2029_v3, %v2028_v7  ;;  %v1372_v48 = vpop.permute.xlu0 %1371  ;;  %v1424_v13 = vpop.permute.xlu1 %1423  ;;  %v3854_v28 = vadd.f32 %v2062_v39, %v2061_v42  ;;  %v1571_v39 = vsel %vm1505_vm3, %v1493_v57, 0.0 }
 0x5f8   : > { %v1484_v51 = vmul.f32 %v1372_v48, %v1291_v29  ;;  %v1987_v52 = vmul.f32 %v1954_v4, %v1372_v48  ;;  %v1494_v3 = vmul.f32 %v1424_v13, %v1301_v59  ;;  %v1997_v29 = vmul.f32 %v1964_v60, %v1424_v13  ;;  %v1298_v48 = vld [vmem:[%s4527_s25 + $0x90] sm:$0xff] }
 0x5f9   : > { %v1528_v55 = vrot.slane %v1527_v43, 2  ;;  %v2031_v56 = vrot.slane %v2030_v45, 2  ;;  %v1548_v42 = vsel %vm1505_vm3, %v1487_v61, 0.0 }
 0x5fa   : > { %v1537_v1 = vsel %vm1505_vm3, %v1484_v51, 0.0  ;;  %v2040_v2 = vsel %vm2008_vm4, %v1987_v52, 0.0  ;;  %v2075_v50 = vsel %vm2008_vm4, %v1997_v29, 0.0  ;;  %v1304_v51 = vld [vmem:[%s4527_s25 + $0xc0] sm:$0xff] }
 0x5fb   : > { %v1529_v5 = vadd.f32 %v1528_v55, %v1527_v43  ;;  %v2032_v7 = vadd.f32 %v2031_v56, %v2030_v45  ;;  %v1538_v12 = vadd.f32 %v1537_v1, %v1536_v26  ;;  %v2041_v15 = vadd.f32 %v2040_v2, %v2039_v27  ;;  %v1440_v20 = vpop.permute.xlu0 %1439  ;;  %v1408_v8 = vpop.permute.xlu1 %1407  ;;  %v1946_v26 = vld [vmem:[%s4528_s7 + $0x18] sm:$0xff]  ;;  %v1967_v52 = vld [vmem:[%s4528_s7 + $0xc0] sm:$0xff] }
 0x5fc   : > { %v1510_v27 = vadd.f32 %v1509_v49, %v3784_v36  ;;  %v2051_v43 = vsel %vm2008_vm4, %v1990_v62, 0.0  ;;  %v1961_v36 = vld [vmem:[%s4528_s7 + $0x90] sm:$0xff]  ;;  %v1572_v49 = vsel %vm1505_vm3, %v1494_v3, 0.0  ;;  %v1491_v61 = vmul.f32 %v1408_v8, %v1298_v48 }
 0x5fd   : > { %v1530_v4 = vrot.slane %v1529_v5, 1  ;;  %v2033_v34 = vrot.slane %v2032_v7, 1  ;;  %v1539_v35 = vrot.slane %v1538_v12, 4  ;;  %v2042_v11 = vrot.slane %v2041_v15, 4 }
 0x5fe   : > { %v1994_v62 = vmul.f32 %v1961_v36, %v1408_v8  ;;  %v1497_v3 = vmul.f32 %v1440_v20, %v1304_v51  ;;  %v2000_v29 = vmul.f32 %v1967_v52, %v1440_v20  ;;  %v1305_v8 = vld [vmem:[%s4527_s25 + $0xc8] sm:$0xff]  ;;  %v1573_v20 = vadd.f32 %v1572_v49, %v1571_v39  ;;  %v1295_v39 = vld [vmem:[%s4527_s25 + $0x78] sm:$0xff] }
 0x5ff   : > { %v1540_v45 = vadd.f32 %v1539_v35, %v1538_v12  ;;  %v2043_v47 = vadd.f32 %v2042_v11, %v2041_v15  ;;  %v1332_v13 = vpop.permute.xlu0 %1331  ;;  %v1444_v37 = vpop.permute.xlu1 %1443  ;;  %v1531_v57 = vadd.f32 %v1530_v4, %v1529_v5  ;;  %v2034_v58 = vadd.f32 %v2033_v34, %v2032_v7  ;;  %v1968_v4 = vld [vmem:[%s4528_s7 + $0xc8] sm:$0xff] }
 0x600   : > { %v1476_v55 = vmul.f32 %v1332_v13, %v1283_v46  ;;  %v1979_v56 = vmul.f32 %v1946_v26, %v1332_v13  ;;  %v1549_v12 = vadd.f32 %v1548_v42, %v3822_v30  ;;  %v2052_v15 = vadd.f32 %v2051_v43, %v3824_v33 }
 0x601   : > { %v1541_v59 = vrot.slane %v1540_v45, 2  ;;  %v2044_v60 = vrot.slane %v2043_v47, 2  ;;  %v3894_v30 = vadd.f32 %v1611_v9, %v1531_v57  ;;  %v3898_v33 = vadd.f32 %v2114_v10, %v2034_v58  ;;  %v1965_v10 = vld [vmem:[%s4528_s7 + $0xb0] sm:$0xff] }
 0x602   : > { %v1511_v1 = vsel %vm1505_vm3, %v1476_v55, 0.0  ;;  %v2014_v2 = vsel %vm2008_vm4, %v1979_v56, 0.0  ;;  %v2076_v34 = vadd.f32 %v2075_v50, %v2074_v40  ;;  %v2087_v9 = vsel %vm2008_vm4, %v2000_v29, 0.0  ;;  %v1958_v40 = vld [vmem:[%s4528_s7 + $0x78] sm:$0xff] }
 0x603   : > { %v1428_v35 = vpop.permute.xlu0 %1427  ;;  %v1392_v11 = vpop.permute.xlu1 %1391  ;;  %v1542_v46 = vadd.f32 %v1541_v59, %v1540_v45  ;;  %v2045_v26 = vadd.f32 %v2044_v60, %v2043_v47  ;;  %v1512_v5 = vadd.f32 %v1511_v1, %v1510_v27  ;;  %v2015_v7 = vadd.f32 %v2014_v2, %v2013_v38  ;;  %v1302_v45 = vld [vmem:[%s4527_s25 + $0xb0] sm:$0xff]  ;;  %v1309_v1 = vld [vmem:[%s4527_s25 + $0xe8] sm:$0xff] }
 0x604   : > { %v1561_v27 = vsel %vm1505_vm3, %v1491_v61, 0.0  ;;  %v2064_v38 = vsel %vm2008_vm4, %v1994_v62, 0.0  ;;  %v1584_v47 = vsel %vm1505_vm3, %v1497_v3, 0.0  ;;  %v1498_v48 = vmul.f32 %v1444_v37, %v1305_v8  ;;  %v1972_v2 = vld [vmem:[%s4528_s7 + $0xe8] sm:$0xff] }
 0x605   : > { %v1513_v42 = vrot.slane %v1512_v5, 4  ;;  %v2016_v43 = vrot.slane %v2015_v7, 4  ;;  %v2001_v36 = vmul.f32 %v1968_v4, %v1444_v37  ;;  %v1543_v50 = vrot.slane %v1542_v46, 1 }
 0x606   : > { %v2046_v51 = vrot.slane %v2045_v26, 1  ;;  %v1642_v37 = vrot.slane %v3894_v30, 7  ;;  %v2145_v56 = vrot.slane %v3898_v33, 7  ;;  %v3919_v57 = vadd.f32 %v1561_v27, %v3852_v21 }
 0x607   : > { %v1464_v13 = vpop.permute.xlu0 %1463  ;;  %v1460_v49 = vpop.permute.xlu1 %1459  ;;  %v1514_v52 = vadd.f32 %v1513_v42, %v1512_v5  ;;  %v2017_v55 = vadd.f32 %v2016_v43, %v2015_v7  ;;  %v3922_v58 = vadd.f32 %v2064_v38, %v3854_v28  ;;  %v1495_v59 = vmul.f32 %v1428_v35, %v1302_v45  ;;  %v1308_v28 = vld [vmem:[%s4527_s25 + $0xe0] sm:$0xff] }
 0x608   : > { %v1998_v60 = vmul.f32 %v1965_v10, %v1428_v35  ;;  %v1488_v61 = vmul.f32 %v1392_v11, %v1295_v39  ;;  %v1991_v62 = vmul.f32 %v1958_v40, %v1392_v11  ;;  %v1585_v21 = vsel %vm1505_vm3, %v1498_v48, 0.0  ;;  %v1971_v35 = vld [vmem:[%s4528_s7 + $0xe0] sm:$0xff] }
 0x609   : > { %v1515_v3 = vrot.slane %v1514_v52, 2  ;;  %v2018_v29 = vrot.slane %v2017_v55, 2  ;;  %v2088_v5 = vsel %vm2008_vm4, %v2001_v36, 0.0  ;;  %v1544_v7 = vadd.f32 %v1543_v50, %v1542_v46  ;;  %v1306_v50 = vld [vmem:[%s4527_s25 + $0xd0] sm:$0xff] }
 0x60a   : > { %v2047_v8 = vadd.f32 %v2046_v51, %v2045_v26  ;;  %v1550_v4 = vsel %vm1505_vm3, %v1488_v61, 0.0  ;;  %v2053_v27 = vsel %vm2008_vm4, %v1991_v62, 0.0  ;;  %v1502_v45 = vmul.f32 %v1464_v13, %v1309_v1 }
 0x60b   : > { %v1448_v11 = vpop.permute.xlu0 %1447  ;;  %v1412_v38 = vpop.permute.xlu1 %1411  ;;  %v1551_v42 = vadd.f32 %v1550_v4, %v1549_v12  ;;  %v2054_v43 = vadd.f32 %v2053_v27, %v2052_v15  ;;  %v2005_v48 = vmul.f32 %v1972_v2, %v1464_v13  ;;  %v1574_v36 = vsel %vm1505_vm3, %v1495_v59, 0.0  ;;  %v1969_v12 = vld [vmem:[%s4528_s7 + $0xd0] sm:$0xff]  ;;  %v1303_v2 = vld [vmem:[%s4527_s25 + $0xb8] sm:$0xff] }
 0x60c   : > { %v2077_v10 = vsel %vm2008_vm4, %v1998_v60, 0.0  ;;  %v1501_v39 = vmul.f32 %v1460_v49, %v1308_v28  ;;  %v2004_v40 = vmul.f32 %v1971_v35, %v1460_v49  ;;  %v3942_v14 = vadd.f32 %v1515_v3, %v1514_v52  ;;  %v1299_v52 = vld [vmem:[%s4527_s25 + $0x98] sm:$0xff] }
 0x60d   : > { %v3944_v6 = vadd.f32 %v2018_v29, %v2017_v55  ;;  %v1552_v46 = vrot.slane %v1551_v42, 4  ;;  %v2055_v26 = vrot.slane %v2054_v43, 4  ;;  %v3954_v15 = vadd.f32 %v1612_v16, %v1544_v7  ;;  %v1962_v16 = vld [vmem:[%s4528_s7 + $0x98] sm:$0xff] }
 0x60e   : > { %v3958_v13 = vadd.f32 %v2115_v17, %v2047_v8  ;;  %v1586_v49 = vadd.f32 %v1585_v21, %v1584_v47  ;;  %v2089_v51 = vadd.f32 %v2088_v5, %v2087_v9  ;;  %v1575_v55 = vadd.f32 %v1574_v36, %v1573_v20  ;;  %v1310_v17 = vld [vmem:[%s4527_s25 + $0xf0] sm:$0xff]  ;;  %v1966_v3 = vld [vmem:[%s4528_s7 + $0xb8] sm:$0xff] }
 0x60f   : > { %v2078_v59 = vadd.f32 %v2077_v10, %v2076_v34  ;;  %v1598_v60 = vsel %vm1505_vm3, %v1502_v45, 0.0  ;;  %v2101_v61 = vsel %vm2008_vm4, %v2005_v48, 0.0  ;;  %v1973_v47 = vld [vmem:[%s4528_s7 + $0xf0] sm:$0xff]  ;;  %v1468_v9 = vpop.permute.xlu0 %1467  ;;  %v1597_v20 = vsel %vm1505_vm3, %v1501_v39, 0.0  ;;  %v1432_v29 = vpop.permute.xlu1 %1431 }
 0x610   : > { %v2100_v34 = vsel %vm2008_vm4, %v2004_v40, 0.0  ;;  %v1499_v62 = vmul.f32 %v1448_v11, %v1306_v50  ;;  %v2002_v1 = vmul.f32 %v1969_v12, %v1448_v11  ;;  %v1517_v21 = vrot.slane %v3942_v14, 1 }
 0x611   : > { %v2020_v5 = vrot.slane %v3944_v6, 1  ;;  %v1553_v28 = vadd.f32 %v1552_v46, %v1551_v42  ;;  %v2056_v35 = vadd.f32 %v2055_v26, %v2054_v43  ;;  %v1492_v7 = vmul.f32 %v1412_v38, %v1299_v52  ;;  %v1311_v43 = vld [vmem:[%s4527_s25 + $0xf8] sm:$0xff] }
 0x612   : > { %v1995_v8 = vmul.f32 %v1962_v16, %v1412_v38  ;;  %v1503_v4 = vmul.f32 %v1468_v9, %v1310_v17  ;;  %v2006_v27 = vmul.f32 %v1973_v47, %v1468_v9  ;;  %v1599_v11 = vadd.f32 %v1598_v60, %v1597_v20  ;;  %v1974_v46 = vld [vmem:[%s4528_s7 + $0xf8] sm:$0xff] }
 0x613   : > { %v2102_v45 = vadd.f32 %v2101_v61, %v2100_v34  ;;  %v1496_v48 = vmul.f32 %v1432_v29, %v1303_v2  ;;  %v1999_v36 = vmul.f32 %v1966_v3, %v1432_v29  ;;  %v1587_v10 = vsel %vm1505_vm3, %v1499_v62, 0.0  ;;  %v1472_v26 = vpop.permute.xlu0 %1471 }
 0x614   : > { %v2090_v39 = vsel %vm2008_vm4, %v2002_v1, 0.0  ;;  %v1563_v40 = vsel %vm1505_vm3, %v1492_v7, 0.0  ;;  %v2066_v50 = vsel %vm2008_vm4, %v1995_v8, 0.0  ;;  %v1554_v12 = vrot.slane %v1553_v28, 2 }
 0x615   : > { %v2057_v53 = vrot.slane %v2056_v35, 2  ;;  %v1564_v42 = vadd.f32 %v1563_v40, %v3919_v57  ;;  %v2067_v38 = vadd.f32 %v2066_v50, %v3922_v58  ;;  %v1600_v52 = vsel %vm1505_vm3, %v1503_v4, 0.0 }
 0x616   : > { %v2103_v60 = vsel %vm2008_vm4, %v2006_v27, 0.0  ;;  %v1576_v61 = vsel %vm1505_vm3, %v1496_v48, 0.0  ;;  %v2079_v16 = vsel %vm2008_vm4, %v1999_v36, 0.0  ;;  %v1588_v57 = vadd.f32 %v1587_v10, %v1586_v49  ;;  %v1307_v49 = vld [vmem:[%s4527_s25 + $0xd8] sm:$0xff] }
 0x617   : > { %v2091_v17 = vadd.f32 %v2090_v39, %v2089_v51  ;;  %v1565_v58 = vrot.slane %v1564_v42, 4  ;;  %v2068_v47 = vrot.slane %v2067_v38, 4  ;;  %v1577_v9 = vadd.f32 %v1576_v61, %v1575_v55  ;;  %v1970_v51 = vld [vmem:[%s4528_s7 + $0xd8] sm:$0xff]  ;;  %v1452_v55 = vpop.permute.xlu1 %1451 }
 0x618   : > { %v2080_v20 = vadd.f32 %v2079_v16, %v2078_v59  ;;  %v1504_v34 = vmul.f32 %v1472_v26, %v1311_v43  ;;  %v2007_v62 = vmul.f32 %v1974_v46, %v1472_v26  ;;  %v1601_v3 = vadd.f32 %v1600_v52, %v1599_v11 }
 0x619   : > { %v1566_v1 = vadd.f32 %v1565_v58, %v1564_v42  ;;  %v2069_v2 = vadd.f32 %v2068_v47, %v2067_v38  ;;  %v2104_v29 = vadd.f32 %v2103_v60, %v2102_v45  ;;  %v1578_v7 = vrot.slane %v1577_v9, 4 }
 0x61a   : > { %v2081_v8 = vrot.slane %v2080_v20, 4  ;;  %v1602_v4 = vsel %vm1505_vm3, %v1504_v34, 0.0  ;;  %v2105_v27 = vsel %vm2008_vm4, %v2007_v62, 0.0  ;;  %v1555_v59 = vadd.f32 %v1554_v12, %v1553_v28 }
 0x61b   : > { %v2058_v48 = vadd.f32 %v2057_v53, %v2056_v35  ;;  %v1567_v36 = vrot.slane %v1566_v1, 2  ;;  %v2070_v11 = vrot.slane %v2069_v2, 2  ;;  %v1579_v45 = vadd.f32 %v1578_v7, %v1577_v9 }
 0x61c   : > { %v2082_v10 = vadd.f32 %v2081_v8, %v2080_v20  ;;  %v1603_v39 = vadd.f32 %v1602_v4, %v1601_v3  ;;  %v2106_v40 = vadd.f32 %v2105_v27, %v2104_v29  ;;  %v1500_v38 = vmul.f32 %v1452_v55, %v1307_v49 }
 0x61d   : > { %v1568_v50 = vadd.f32 %v1567_v36, %v1566_v1  ;;  %v2071_v42 = vadd.f32 %v2070_v11, %v2069_v2  ;;  %v2003_v43 = vmul.f32 %v1970_v51, %v1452_v55  ;;  %v1580_v46 = vrot.slane %v1579_v45, 2 }
 0x61e   : > { %v2083_v26 = vrot.slane %v2082_v10, 2  ;;  %v1604_v52 = vrot.slane %v1603_v39, 4  ;;  %v2107_v60 = vrot.slane %v2106_v40, 4  ;;  %v1556_v61 = vrot.slane %v1555_v59, 1 }
 0x61f   : > { %v2059_v16 = vrot.slane %v2058_v48, 1  ;;  %v1589_v58 = vsel %vm1505_vm3, %v1500_v38, 0.0  ;;  %v2092_v53 = vsel %vm2008_vm4, %v2003_v43, 0.0  ;;  %v1581_v28 = vadd.f32 %v1580_v46, %v1579_v45 }
 0x620   : > { %v2084_v35 = vadd.f32 %v2083_v26, %v2082_v10  ;;  %v1605_v12 = vadd.f32 %v1604_v52, %v1603_v39  ;;  %v2108_v47 = vadd.f32 %v2107_v60, %v2106_v40  ;;  %v1569_v9 = vrot.slane %v1568_v50, 1 }
 0x621   : > { %v2072_v20 = vrot.slane %v2071_v42, 1  ;;  %v1590_v34 = vadd.f32 %v1589_v58, %v1588_v57  ;;  %v2093_v62 = vadd.f32 %v2092_v53, %v2091_v17  ;;  %v1582_v1 = vrot.slane %v1581_v28, 1 }
 0x622   : > { %v2085_v2 = vrot.slane %v2084_v35, 1  ;;  %v1606_v3 = vrot.slane %v1605_v12, 2  ;;  %v2109_v29 = vrot.slane %v2108_v47, 2  ;;  %v1557_v7 = vadd.f32 %v1556_v61, %v1555_v59 }
 0x623   : > { %v2060_v8 = vadd.f32 %v2059_v16, %v2058_v48  ;;  %v1591_v4 = vrot.slane %v1590_v34, 4  ;;  %v2094_v27 = vrot.slane %v2093_v62, 4  ;;  %v1518_v49 = vadd.f32 %v1517_v21, %v3942_v14 }
 0x624   : > { %v2021_v51 = vadd.f32 %v2020_v5, %v3944_v6  ;;  %v1607_v55 = vadd.f32 %v1606_v3, %v1605_v12  ;;  %v2110_v57 = vadd.f32 %v2109_v29, %v2108_v47  ;;  %v1570_v17 = vadd.f32 %v1569_v9, %v1568_v50 }
 0x625   : > { %v2073_v36 = vadd.f32 %v2072_v20, %v2071_v42  ;;  %v1592_v11 = vadd.f32 %v1591_v4, %v1590_v34  ;;  %v2095_v45 = vadd.f32 %v2094_v27, %v2093_v62  ;;  %v1583_v59 = vadd.f32 %v1582_v1, %v1581_v28 }
 0x626   : > { %v2086_v48 = vadd.f32 %v2085_v2, %v2084_v35  ;;  %v1608_v10 = vrot.slane %v1607_v55, 1  ;;  %v2111_v39 = vrot.slane %v2110_v57, 1  ;;  %v4018_v14 = vadd.f32 %v1613_v18, %v1557_v7 }
 0x627   : > { %v4022_v6 = vadd.f32 %v2116_v19, %v2060_v8  ;;  %v1593_v21 = vrot.slane %v1592_v11, 2  ;;  %v2096_v5 = vrot.slane %v2095_v45, 2  ;;  %v4025_v40 = vadd.f32 %v1518_v49, %v3681_v63 }
 0x628   : > { %v4028_v50 = vadd.f32 %v2021_v51, %v3686_v0  ;;  %v2112_v42 = vadd.f32 %v2111_v39, %v2110_v57  ;;  %v1609_v38 = vadd.f32 %v1608_v10, %v1607_v55  ;;  %v4032_v43 = vadd.f32 %v1614_v22, %v1570_v17 }
 0x629   : > { %v2133_v18 = vadd.f32 %v2117_v23, %v2073_v36  ;;  %v1594_v19 = vadd.f32 %v1593_v21, %v1592_v11  ;;  %v2097_v46 = vadd.f32 %v2096_v5, %v2095_v45  ;;  %v1645_v26 = vrot.slane %v3954_v15, 6 }
 0x62a   : > { %v2147_v52 = vrot.slane %v3958_v13, 6  ;;  %v2134_v60 = vadd.f32 %v2118_v24, %v2086_v48  ;;  %v4042_v61 = vadd.f32 %v1615_v32, %v1583_v59  ;;  %v1648_v16 = vrot.slane %v4018_v14, 5 }
 0x62b   : > { %v2149_v22 = vrot.slane %v4022_v6, 5  ;;  %v1595_v58 = vrot.slane %v1594_v19, 1  ;;  %v2098_v53 = vrot.slane %v2097_v46, 1  ;;  %v4048_v23 = vadd.f32 %v2120_v31, %v2112_v42 }
 0x62c   : > { %v2146_v28 = vsel %vm1643_vm5, %v2145_v56, %v4028_v50  ;;  %v4056_v24 = vadd.f32 %v1617_v54, %v1609_v38  ;;  %v1644_v32 = vsel %vm1643_vm5, %v1642_v37, %v4025_v40  ;;  %v2151_v47 = vrot.slane %v2133_v18, 4 }
 0x62d   : > { %v1596_v35 = vadd.f32 %v1595_v58, %v1594_v19  ;;  %v2099_v12 = vadd.f32 %v2098_v53, %v2097_v46  ;;  %v1651_v31 = vrot.slane %v4032_v43, 4  ;;  %v2153_v9 = vrot.slane %v2134_v60, 3 }
 0x62e   : > { %v1654_v20 = vrot.slane %v4042_v61, 3  ;;  %v2148_v54 = vsel %vm1646_vm6, %v2147_v52, %v2146_v28  ;;  %v4529_v34 = vrot.slane %v3681_v63, 6  ;;  %v1647_v37 = vsel %vm1646_vm6, %v1645_v26, %v1644_v32 }
 0x62f   : > { %v4066_v56 = vadd.f32 %v2119_v25, %v2099_v12  ;;  %v2150_v1 = vsel %vm1649_vm7, %v2149_v22, %v2148_v54  ;;  %v2157_v2 = vrot.slane %v4048_v23, 1  ;;  %v1650_v3 = vsel %vm1649_vm7, %v1648_v16, %v1647_v37 }
 0x630   : > { %v4071_v62 = vadd.f32 %v4529_v34, %v1596_v35  ;;  %v1660_v29 = vrot.slane %v4056_v24, 1  ;;  %v2152_v0 = vsel %vm1652_vm8, %v2151_v47, %v2150_v1  ;;  %v1653_v7 = vsel %vm1652_vm8, %v1651_v31, %v1650_v3 }
 0x631   : > { %v2155_v25 = vrot.slane %v4066_v56, 2  ;;  %v2154_v8 = vsel %vm1655_vm9, %v2153_v9, %v2152_v0  ;;  %v1656_v4 = vsel %vm1655_vm9, %v1654_v20, %v1653_v7 }
 0x632   : > { %v1657_v63 = vrot.slane %v4071_v62, 2 }
 0x633   : > { %v2156_v27 = vsel %vm1658_vm10, %v2155_v25, %v2154_v8 }
 0x634   : > { %v1659_v49 = vsel %vm1658_vm10, %v1657_v63, %v1656_v4  ;;  %v2158_v51 = vsel %vm1661_vm11, %v2157_v2, %v2156_v27 }
 0x635   : > { %v1662_v55 = vsel %vm1661_vm11, %v1660_v29, %v1659_v49  ;;  %v2160_v57 = vsel %vm2008_vm4, %v2158_v51, -inf }
 0x636   : > { %v1664_v17 = vsel %vm1505_vm3, %v1662_v55, -inf  ;;  %2161 = vmax.xlane.f32.xlu1 %v2160_v57 }
 0x637   : > { %1665 = vmax.xlane.f32.xlu0 %v1664_v17 }
 0x6c3   : > { %v2162_v36 = vpop.xlane.xlu1 %2161 }
 0x6c4   : > { %v2164_v11 = vrot.slane %v2162_v36, 1  ;;  %v2165_v45 = vrot.slane %v2162_v36, 2  ;;  %v2166_v59 = vrot.slane %v2162_v36, 3  ;;  %v2167_v48 = vrot.slane %v2162_v36, 4  ;;  %v1666_v10 = vpop.xlane.xlu0 %1665 }
 0x6c5   : > { %v2168_v39 = vrot.slane %v2162_v36, 5  ;;  %v2169_v21 = vrot.slane %v2162_v36, 6  ;;  %v2170_v5 = vrot.slane %v2162_v36, 7  ;;  %v2179_v42 = vsub.f32 %v4028_v50, %v2162_v36 }
 0x6c6   : > { %v2180_v38 = vsub.f32 %v3898_v33, %v2164_v11  ;;  %v2181_v19 = vsub.f32 %v3958_v13, %v2165_v45  ;;  %v2182_v46 = vsub.f32 %v4022_v6, %v2166_v59  ;;  %v2183_v26 = vsub.f32 %v2133_v18, %v2167_v48 }
 0x6c7   : > { %v2184_v52 = vsub.f32 %v2134_v60, %v2168_v39  ;;  %v2187_v16 = vmul.f32 1.442695, %v2179_v42  ;;  %v1668_v22 = vrot.slane %v1666_v10, 1  ;;  %v1669_v58 = vrot.slane %v1666_v10, 2 }
 0x6c8   : > { %v2189_v53 = vmul.f32 1.442695, %v2180_v38  ;;  %v2191_v28 = vmul.f32 1.442695, %v2181_v19  ;;  %v2193_v32 = vmul.f32 1.442695, %v2182_v46  ;;  %v1683_v35 = vsub.f32 %v4025_v40, %v1666_v10 }
 0x6c9   : > { %3230 = vpow2.f32 %v2187_v16  ;;  %v2195_v12 = vmul.f32 1.442695, %v2183_v26  ;;  %v1670_v47 = vrot.slane %v1666_v10, 3  ;;  %v1671_v50 = vrot.slane %v1666_v10, 4 }
 0x6ca   : > { %3232 = vpow2.f32 %v2189_v53  ;;  %v1672_v33 = vrot.slane %v1666_v10, 5  ;;  %v1673_v31 = vrot.slane %v1666_v10, 6  ;;  %v1674_v13 = vrot.slane %v1666_v10, 7 }
 0x6cb   : > { %3234 = vpow2.f32 %v2191_v28  ;;  %v1684_v6 = vsub.f32 %v3894_v30, %v1668_v22  ;;  %v1685_v18 = vsub.f32 %v3954_v15, %v1669_v58  ;;  %v1686_v60 = vsub.f32 %v4018_v14, %v1670_v47 }
 0x6cc   : > { %3236 = vpow2.f32 %v2193_v32  ;;  %v1687_v9 = vsub.f32 %v4032_v43, %v1671_v50  ;;  %v1688_v40 = vsub.f32 %v4042_v61, %v1672_v33  ;;  %v1691_v20 = vmul.f32 1.442695, %v1683_v35 }
 0x6cd   : > { %3238 = vpow2.f32 %v2195_v12  ;;  %v1693_v54 = vmul.f32 1.442695, %v1684_v6  ;;  %v1695_v34 = vmul.f32 1.442695, %v1685_v18  ;;  %v1697_v37 = vmul.f32 1.442695, %v1686_v60 }
 0x6ce   : > { %3240 = vpow2.f32 %v1691_v20  ;;  %v1699_v1 = vmul.f32 1.442695, %v1687_v9  ;;  %v2185_v2 = vsub.f32 %v4066_v56, %v2169_v21  ;;  %v2186_v30 = vsub.f32 %v4048_v23, %v2170_v5 }
 0x6cf   : > { %3242 = vpow2.f32 %v1693_v54  ;;  %v2197_v15 = vmul.f32 1.442695, %v2184_v52  ;;  %v1689_v14 = vsub.f32 %v4071_v62, %v1673_v31  ;;  %v1690_v43 = vsub.f32 %v4056_v24, %v1674_v13 }
 0x6d0   : > { %3244 = vpow2.f32 %v1695_v34  ;;  %v2199_v3 = vmul.f32 1.442695, %v2185_v2  ;;  %v2201_v61 = vmul.f32 1.442695, %v2186_v30  ;;  %v1701_v29 = vmul.f32 1.442695, %v1688_v40 }
 0x6d1   : > { %3246 = vpow2.f32 %v1697_v37  ;;  %v1703_v25 = vmul.f32 1.442695, %v1689_v14  ;;  %v1705_v56 = vmul.f32 1.442695, %v1690_v43 }
 0x6d2   : > { %3248 = vpow2.f32 %v1699_v1 }
 0x6d3   : > { %v3231_v0 = vpop.eup %3230  ;;  %3250 = vpow2.f32 %v2197_v15 }
 0x6d4   : > { %v4104_v7 = vpop.eup %3232  ;;  %3252 = vpow2.f32 %v2199_v3 }
 0x6d5   : > { %v4106_v23 = vpop.eup %3234  ;;  %3254 = vpow2.f32 %v2201_v61  ;;  %v2211_v62 = vrot.slane %v4104_v7, 7 }
 0x6d6   : > { %v3237_v63 = vpop.eup %3236  ;;  %v2213_v8 = vrot.slane %v4106_v23, 6  ;;  %3256 = vpow2.f32 %v1701_v29 }
 0x6d7   : > { %v4110_v24 = vpop.eup %3238  ;;  %v2212_v4 = vsel %vm1643_vm5, %v2211_v62, %v3231_v0  ;;  %3258 = vpow2.f32 %v1703_v25  ;;  %v2215_v51 = vrot.slane %v3237_v63, 5 }
 0x6d8   : > { %v3241_v27 = vpop.eup %3240  ;;  %v2214_v49 = vsel %vm1646_vm6, %v2213_v8, %v2212_v4  ;;  %3260 = vpow2.f32 %v1705_v56  ;;  %v2217_v45 = vrot.slane %v4110_v24, 4 }
 0x6d9   : > { %v3243_v55 = vpop.eup %3242  ;;  %v2216_v17 = vsel %vm1649_vm7, %v2215_v51, %v2214_v49 }
 0x6da   : > { %v4114_v57 = vpop.eup %3244  ;;  %v1715_v36 = vrot.slane %v3243_v55, 7  ;;  %v2218_v5 = vsel %vm1652_vm8, %v2217_v45, %v2216_v17 }
 0x6db   : > { %v4117_v11 = vpop.eup %3246  ;;  %v1717_v59 = vrot.slane %v4114_v57, 6 }
 0x6dc   : > { %v4121_v48 = vpop.eup %3248  ;;  %v1716_v10 = vsel %vm1643_vm5, %v1715_v36, %v3241_v27  ;;  %v1719_v39 = vrot.slane %v4117_v11, 5 }
 0x6dd   : > { %v3251_v21 = vpop.eup %3250  ;;  %v1718_v42 = vsel %vm1646_vm6, %v1717_v59, %v1716_v10  ;;  %v1721_v26 = vrot.slane %v4121_v48, 4 }
 0x6de   : > { %v4127_v38 = vpop.eup %3252  ;;  %v2219_v19 = vrot.slane %v3251_v21, 3  ;;  %v1720_v46 = vsel %vm1649_vm7, %v1719_v39, %v1718_v42 }
 0x6df   : > { %v4131_v52 = vpop.eup %3254  ;;  %v2221_v16 = vrot.slane %v4127_v38, 2  ;;  %v1722_v28 = vsel %vm1652_vm8, %v1721_v26, %v1720_v46 }
 0x6e0   : > { %v4134_v22 = vpop.eup %3256  ;;  %v2220_v58 = vsel %vm1655_vm9, %v2219_v19, %v2218_v5  ;;  %v2223_v53 = vrot.slane %v4131_v52, 1 }
 0x6e1   : > { %v4139_v32 = vpop.eup %3258  ;;  %v2222_v35 = vsel %vm1658_vm10, %v2221_v16, %v2220_v58  ;;  %v1723_v12 = vrot.slane %v4134_v22, 3 }
 0x6e2   : > { %v4143_v47 = vpop.eup %3260  ;;  %v2224_v50 = vsel %vm1661_vm11, %v2223_v53, %v2222_v35  ;;  %v1725_v33 = vrot.slane %v4139_v32, 2 }
 0x6e3   : > { %v2226_v31 = vsel %vm2008_vm4, %v2224_v50, 0.0  ;;  %v1724_v13 = vsel %vm1655_vm9, %v1723_v12, %v1722_v28  ;;  %v1727_v6 = vrot.slane %v4143_v47, 1  ;;  %v2380_v12 = vld [vmem:[%s4477_s16 + $0x10] sm:$0xff]  ;;  %v2381_v50 = vld [vmem:[%s4477_s16 + $0x18] sm:$0xff] }
 0x6e4   : > { %2227 = vadd.xlane.f32.xlu0 %v2226_v31  ;;  %v1726_v18 = vsel %vm1658_vm10, %v1725_v33, %v1724_v13  ;;  %v3146_v31 = vpack.c.bf16 %v2381_v50, %v2380_v12 }
 0x6e5   : > { %v1728_v60 = vsel %vm1661_vm11, %v1727_v6, %v1726_v18  ;;  %v2374_v6 = vld [vmem:[%s4476_s15] sm:$0xff]  ;;  %v2375_v18 = vld [vmem:[%s4476_s15 + $0x8] sm:$0xff] }
 0x6e6   : > { %v1730_v9 = vsel %vm1505_vm3, %v1728_v60, 0.0  ;;  %v2376_v60 = vld [vmem:[%s4476_s15 + $0x10] sm:$0xff] }
 0x6e7   : > { %1731 = vadd.xlane.f32.xlu1 %v1730_v9 }
 0x771   : > { %v2228_v40 = vpop.xlane.xlu0 %2227 }
 0x772   : > { %3262 = vrcp.f32 %v2228_v40 }
 0x774   : > { %v1732_v20 = vpop.xlane.xlu1 %1731 }
 0x775   : > { %3264 = vrcp.f32 %v1732_v20  ;;  %v1935_v20 = vld [vmem:[%s4532_s9] sm:$0xff] }
 0x77c   : > { %v3263_v54 = vpop.eup %3262 }
 0x77d   : > { %v2246_v34 = vmul.f32 %v3263_v54, %v3231_v0  ;;  %v2231_v37 = vrot.slane %v3263_v54, 1  ;;  %v2233_v30 = vrot.slane %v3263_v54, 3  ;;  %v2232_v43 = vrot.slane %v3263_v54, 2 }
 0x77e   : > { %v2235_v49 = vrot.slane %v3263_v54, 5  ;;  %v2236_v10 = vrot.slane %v3263_v54, 6 }
 0x77f   : > { %v4153_v1 = vpop.eup %3264  ;;  %v2257_v2 = vrot.slane %v2246_v34, %v3668_v44  ;;  %v2247_v3 = vmul.f32 %v4104_v7, %v2231_v37  ;;  %v2249_v61 = vmul.f32 %v3237_v63, %v2233_v30  ;;  %v2248_v25 = vmul.f32 %v4106_v23, %v2232_v43  ;;  %v1937_v43 = vld [vmem:[%s4532_s9 + $0x10] sm:$0xff] }
 0x780   : > { %v1750_v15 = vmul.f32 %v4153_v1, %v3241_v27  ;;  %v1735_v29 = vrot.slane %v4153_v1, 1  ;;  %v1736_v8 = vrot.slane %v4153_v1, 2  ;;  %v2234_v7 = vrot.slane %v3263_v54, 4 }
 0x781   : > { %2259 = vbcast.lane.b32.xlu0 %v2257_v2, 256  ;;  %v2264_v0 = vrot.slane %v2247_v3, %v3668_v44  ;;  %v2278_v56 = vrot.slane %v2249_v61, %v3668_v44  ;;  %v2271_v4 = vrot.slane %v2248_v25, %v3668_v44  ;;  %v2251_v17 = vmul.f32 %v3251_v21, %v2235_v49 }
 0x782   : > { %v1761_v14 = vrot.slane %v1750_v15, %v3668_v44  ;;  %v1751_v62 = vmul.f32 %v3243_v55, %v1735_v29  ;;  %v1752_v27 = vmul.f32 %v4114_v57, %v1736_v8  ;;  %v2250_v51 = vmul.f32 %v4110_v24, %v2234_v7 }
 0x783   : > { %v1737_v55 = vrot.slane %v4153_v1, 3  ;;  %v2292_v45 = vrot.slane %v2251_v17, %v3668_v44  ;;  %v1738_v57 = vrot.slane %v4153_v1, 4  ;;  %v2237_v21 = vrot.slane %v3263_v54, 7 }
 0x784   : > { %1763 = vbcast.lane.b32.xlu1 %v1761_v14, 256  ;;  %v1772_v63 = vrot.slane %v1751_v62, %v3668_v44  ;;  %v1783_v23 = vrot.slane %v1752_v27, %v3668_v44  ;;  %v2285_v36 = vrot.slane %v2250_v51, %v3668_v44  ;;  %v2252_v5 = vmul.f32 %v4127_v38, %v2236_v10  ;;  %v2378_v38 = vld [vmem:[%s4477_s16] sm:$0xff] }
 0x785   : > { %1767 = vbcast.lane.b32.xlu0 %v1761_v14, 264  ;;  %v1753_v59 = vmul.f32 %v4117_v11, %v1737_v55  ;;  %v1754_v39 = vmul.f32 %v4121_v48, %v1738_v57  ;;  %v2253_v19 = vmul.f32 %v4131_v52, %v2237_v21  ;;  %v1739_v11 = vrot.slane %v4153_v1, 5  ;;  %v2379_v52 = vld [vmem:[%s4477_s16 + $0x8] sm:$0xff] }
 0x786   : > { %v2299_v46 = vrot.slane %v2252_v5, %v3668_v44  ;;  %v1740_v48 = vrot.slane %v4153_v1, 6  ;;  %v1741_v28 = vrot.slane %v4153_v1, 7  ;;  %v3143_v35 = vpack.c.bf16 %v2379_v52, %v2378_v38  ;;  %v1936_v1 = vld [vmem:[%s4532_s9 + $0x8] sm:$0xff] }
 0x787   : > { %v1794_v24 = vrot.slane %v1753_v59, %v3668_v44  ;;  %v1805_v42 = vrot.slane %v1754_v39, %v3668_v44  ;;  %v2306_v26 = vrot.slane %v2253_v19, %v3668_v44  ;;  %v1755_v16 = vmul.f32 %v4134_v22, %v1739_v11  ;;  %v1940_v5 = vld [vmem:[%s4532_s9 + $0x28] sm:$0xff] }
 0x788   : > { %2266 = vbcast.lane.b32.xlu1 %v2264_v0, 256  ;;  %v1756_v53 = vmul.f32 %v4139_v32, %v1740_v48  ;;  %3144 = vmatpush3.bf16.msra.mxu0 %v3143_v35  ;;  %v4530_v22 = vmov 0.0|0.0   ;;  %v1757_v32 = vmul.f32 %v4143_v47, %v1741_v28  ;;  %v3149_v47 = vpack.c.bf16 %v2375_v18, %v2374_v6 }
 0x789   : > { %2280 = vbcast.lane.b32.xlu0 %v2278_v56, 256  ;;  %v1816_v58 = vrot.slane %v1755_v16, %v3668_v44  ;;  %3145 = vmatprep.subr.bf16.mxu0 %v4530_v22 }
 0x78a   : > { %v1827_v33 = vrot.slane %v1756_v53, %v3668_v44  ;;  %v1838_v13 = vrot.slane %v1757_v32, %v3668_v44  ;;  %v2377_v44 = vld [vmem:[%s4476_s15 + $0x18] sm:$0xff]  ;;  %3150 = vmatpush3.bf16.msra.mxu1 %v3149_v47 }
 0x78b   : > { %v3152_v9 = vpack.c.bf16 %v2377_v44, %v2376_v60  ;;  %3151 = vmatprep.subr.bf16.mxu1 %v4530_v22 }
 0x78c   : > { %2273 = vbcast.lane.b32.xlu1 %v2271_v4, 256  ;;  %3147 = vmatpush3.bf16.msra.mxu0 %v3146_v31 }
 0x78d   : > { %1778 = vbcast.lane.b32.xlu0 %v1772_v63, 264  ;;  %3154 = vmatprep.subr.bf16.mxu0 %v4530_v22 }
 0x78e   : > { %3153 = vmatpush3.bf16.msra.mxu1 %v3152_v9 }
 0x78f   : > { %3160 = vmatprep.subr.bf16.mxu1 %v4530_v22 }
 0x790   : > { %1774 = vbcast.lane.b32.xlu1 %v1772_v63, 256 }
 0x791   : > { %1785 = vbcast.lane.b32.xlu0 %v1783_v23, 256 }
 0x794   : > { %2287 = vbcast.lane.b32.xlu1 %v2285_v36, 256 }
 0x795   : > { %2294 = vbcast.lane.b32.xlu0 %v2292_v45, 256 }
 0x798   : > { %1789 = vbcast.lane.b32.xlu1 %v1783_v23, 264 }
 0x799   : > { %1800 = vbcast.lane.b32.xlu0 %v1794_v24, 264 }
 0x79c   : > { %1796 = vbcast.lane.b32.xlu1 %v1794_v24, 256  ;;  %v1939_v24 = vld [vmem:[%s4532_s9 + $0x20] sm:$0xff] }
 0x79d   : > { %1807 = vbcast.lane.b32.xlu0 %v1805_v42, 256 }
 0x7a0   : > { %2301 = vbcast.lane.b32.xlu1 %v2299_v46, 256 }
 0x7a1   : > { %2308 = vbcast.lane.b32.xlu0 %v2306_v26, 256 }
 0x7a4   : > { %1811 = vbcast.lane.b32.xlu1 %v1805_v42, 264 }
 0x7a5   : > { %1822 = vbcast.lane.b32.xlu0 %v1816_v58, 264 }
 0x7a8   : > { %1818 = vbcast.lane.b32.xlu1 %v1816_v58, 256 }
 0x7a9   : > { %1833 = vbcast.lane.b32.xlu0 %v1827_v33, 264 }
 0x7ac   : > { %1829 = vbcast.lane.b32.xlu1 %v1827_v33, 256 }
 0x7ad   : > { %1844 = vbcast.lane.b32.xlu0 %v1838_v13, 264 }
 0x7b0   : > { %1840 = vbcast.lane.b32.xlu1 %v1838_v13, 256 }
 0x7b4   : > { %1260 = vrot.lane.b32.xlu1 %v3665_v41, %s4531_s5  ;;  %v1938_v41 = vld [vmem:[%s4532_s9 + $0x18] sm:$0xff]  ;;  %s4533_s5 = sld [smem:[#allocation14_spill]] }
 0x7ba   : > { %v1265_v61 = vld [vmem:[%s4533_s5 + $0x8] sm:$0xf]  ;;  %v1264_v56 = vld [vmem:[%s4533_s5] sm:$0xff]  ;;  %v1267_v55 = vld [vmem:[%s4533_s5 + $0x18] sm:$0xf] }
 0x7bb   : > { %v1266_v36 = vld [vmem:[%s4533_s5 + $0x10] sm:$0xff]  ;;  %v1269_v53 = vld [vmem:[%s4533_s5 + $0x28] sm:$0xf]  ;;  %v1268_v12 = vld [vmem:[%s4533_s5 + $0x20] sm:$0xff] }
 0x7bc   : > { %v1271_v18 = vld [vmem:[%s4533_s5 + $0x38] sm:$0xf] }
 0x7f3   : > { %v2260_v40 = vpop.permute.xlu0 %2259 }
 0x7f4   : > { %v2310_v34 = vmul.f32 %v2260_v40, %v1935_v20 }
 0x7f6   : > { %v1764_v54 = vpop.permute.xlu1 %1763  ;;  %v2318_v30 = vsel %vm699_vm2, %v2310_v34, 0.0 }
 0x7f7   : > { %v1768_v37 = vpop.permute.xlu0 %1767  ;;  %v2319_v0 = vrot.slane %v2318_v30, 4  ;;  %v1846_v49 = vmul.f32 %v1764_v54, %v1264_v56  ;;  %v1941_v56 = vld [vmem:[%s4532_s9 + $0x30] sm:$0xff] }
 0x7f8   : > { %v1847_v63 = vmul.f32 %v1768_v37, %v1265_v61 }
 0x7f9   : > { %v2320_v51 = vadd.f32 %v2319_v0, %v2318_v30  ;;  %v1862_v42 = vsel %vm699_vm2, %v1846_v49, 0.0 }
 0x7fa   : > { %v2267_v2 = vpop.permute.xlu1 %2266  ;;  %v1864_v10 = vsel %vm1863_vm12, %v1847_v63, 0.0  ;;  %v4283_v63 = vld [vmem:[%s4478_s17] sm:$0xff] }
 0x7fb   : > { %v2311_v15 = vmul.f32 %v2267_v2, %v1936_v1  ;;  %v2281_v14 = vpop.permute.xlu0 %2280  ;;  %v2321_v19 = vrot.slane %v2320_v51, 2  ;;  %v1865_v16 = vadd.f32 %v1864_v10, %v1862_v42  ;;  %v1270_v1 = vld [vmem:[%s4533_s5 + $0x30] sm:$0xff] }
 0x7fc   : > { %v2313_v3 = vmul.f32 %v2281_v14, %v1938_v41 }
 0x7fd   : > { %v2325_v29 = vsel %vm699_vm2, %v2311_v15, 0.0  ;;  %v2322_v33 = vadd.f32 %v2321_v19, %v2320_v51  ;;  %v1866_v47 = vrot.slane %v1865_v16, 4 }
 0x7fe   : > { %v2274_v25 = vpop.permute.xlu1 %2273  ;;  %v2326_v62 = vrot.slane %v2325_v29, 4  ;;  %v2339_v8 = vsel %vm699_vm2, %v2313_v3, 0.0 }
 0x7ff   : > { %v2312_v4 = vmul.f32 %v2274_v25, %v1937_v43  ;;  %v1779_v7 = vpop.permute.xlu0 %1778  ;;  %v2340_v23 = vrot.slane %v2339_v8, 4  ;;  %v2323_v43 = vrot.slane %v2322_v33, 1  ;;  %v4273_v61 = vadd.f32 %v1866_v47, %v1865_v16 }
 0x800   : > { %v2327_v59 = vadd.f32 %v2326_v62, %v2325_v29  ;;  %v1849_v39 = vmul.f32 %v1779_v7, %v1267_v55 }
 0x801   : > { %v2332_v27 = vsel %vm699_vm2, %v2312_v4, 0.0  ;;  %v2341_v11 = vadd.f32 %v2340_v23, %v2339_v8  ;;  %v1868_v42 = vrot.slane %v4273_v61, 2 }
 0x802   : > { %v2333_v17 = vrot.slane %v2332_v27, 4  ;;  %v1775_v45 = vpop.permute.xlu1 %1774  ;;  %v2328_v48 = vrot.slane %v2327_v59, 2  ;;  %v1873_v28 = vsel %vm1863_vm12, %v1849_v39, 0.0 }
 0x803   : > { %v1786_v57 = vpop.permute.xlu0 %1785  ;;  %v1848_v21 = vmul.f32 %v1775_v45, %v1266_v36  ;;  %v2342_v32 = vrot.slane %v2341_v11, 2  ;;  %v1272_v36 = vld [vmem:[%s4533_s5 + $0x40] sm:$0xff] }
 0x804   : > { %v2334_v46 = vadd.f32 %v2333_v17, %v2332_v27  ;;  %v2329_v60 = vadd.f32 %v2328_v48, %v2327_v59  ;;  %v1850_v54 = vmul.f32 %v1786_v57, %v1268_v12  ;;  %v4288_v27 = vld [vmem:[%s4478_s17 + $0x8] sm:$0xff]  ;;  %v1942_v59 = vld [vmem:[%s4532_s9 + $0x38] sm:$0xff] }
 0x805   : > { %v1872_v35 = vsel %vm699_vm2, %v1848_v21, 0.0  ;;  %v2343_v2 = vadd.f32 %v2342_v32, %v2341_v11  ;;  %v3155_v21 = vpack.c.bf16 %v4288_v27, %v4283_v63 }
 0x806   : > { %v2288_v26 = vpop.permute.xlu1 %2287  ;;  %v2335_v31 = vrot.slane %v2334_v46, 2  ;;  %v1874_v20 = vadd.f32 %v1873_v28, %v1872_v35  ;;  %v2330_v62 = vrot.slane %v2329_v60, 1  ;;  %v1881_v4 = vsel %vm699_vm2, %v1850_v54, 0.0 }
 0x807   : > { %v2314_v38 = vmul.f32 %v2288_v26, %v1939_v24  ;;  %v2295_v52 = vpop.permute.xlu0 %2294  ;;  %v2344_v23 = vrot.slane %v2343_v2, 1 }
 0x808   : > { %v2315_v58 = vmul.f32 %v2295_v52, %v1940_v5  ;;  %v2336_v30 = vadd.f32 %v2335_v31, %v2334_v46  ;;  %v1875_v8 = vrot.slane %v1874_v20, 4  ;;  %v2324_v5 = vadd.f32 %v2323_v43, %v2322_v33  ;;  %v1273_v46 = vld [vmem:[%s4533_s5 + $0x48] sm:$0xf]  ;;  %v1275_v52 = vld [vmem:[%s4533_s5 + $0x58] sm:$0xf] }
 0x809   : > { %v2346_v50 = vsel %vm699_vm2, %v2314_v38, 0.0  ;;  %v2331_v19 = vadd.f32 %v2330_v62, %v2329_v60 }
 0x80a   : > { %v2347_v13 = vrot.slane %v2346_v50, 4  ;;  %v1790_v6 = vpop.permute.xlu1 %1789  ;;  %v2353_v44 = vsel %vm699_vm2, %v2315_v58, 0.0  ;;  %v2337_v17 = vrot.slane %v2336_v30, 1  ;;  %v1876_v11 = vadd.f32 %v1875_v8, %v1874_v20  ;;  %v1276_v8 = vld [vmem:[%s4533_s5 + $0x60] sm:$0xff] }
 0x80b   : > { %v1851_v9 = vmul.f32 %v1790_v6, %v1269_v53  ;;  %v1801_v40 = vpop.permute.xlu0 %1800  ;;  %v2354_v37 = vrot.slane %v2353_v44, 4  ;;  %v2345_v58 = vadd.f32 %v2344_v23, %v2343_v2  ;;  %v2390_v6 = vsel %vm1643_vm5, %v2331_v19, %v2324_v5 }
 0x80c   : > { %v2348_v34 = vadd.f32 %v2347_v13, %v2346_v50  ;;  %v1853_v41 = vmul.f32 %v1801_v40, %v1271_v18  ;;  %v2338_v53 = vadd.f32 %v2337_v17, %v2336_v30  ;;  %v1277_v30 = vld [vmem:[%s4533_s5 + $0x68] sm:$0xf] }
 0x80d   : > { %v2355_v15 = vadd.f32 %v2354_v37, %v2353_v44  ;;  %v1882_v14 = vsel %vm1863_vm12, %v1851_v9, 0.0  ;;  %v1274_v44 = vld [vmem:[%s4533_s5 + $0x50] sm:$0xff]  ;;  %v1877_v9 = vrot.slane %v1876_v11, 2 }
 0x80e   : > { %v1797_v3 = vpop.permute.xlu1 %1796  ;;  %v2349_v29 = vrot.slane %v2348_v34, 2  ;;  %v1891_v7 = vsel %vm1863_vm12, %v1853_v41, 0.0  ;;  %v1883_v49 = vadd.f32 %v1882_v14, %v1881_v4 }
 0x80f   : > { %v1852_v0 = vmul.f32 %v1797_v3, %v1270_v1  ;;  %v1808_v25 = vpop.permute.xlu0 %1807  ;;  %v2356_v55 = vrot.slane %v2355_v15, 2  ;;  %v1878_v4 = vadd.f32 %v1877_v9, %v1876_v11 }
 0x810   : > { %v2350_v57 = vadd.f32 %v2349_v29, %v2348_v34  ;;  %v1884_v26 = vrot.slane %v1883_v49, 4  ;;  %v1854_v16 = vmul.f32 %v1808_v25, %v1272_v36 }
 0x811   : > { %v1890_v51 = vsel %vm699_vm2, %v1852_v0, 0.0  ;;  %v2357_v28 = vadd.f32 %v2356_v55, %v2355_v15  ;;  %v2391_v15 = vsel %vm1646_vm6, %v2338_v53, %v2390_v6  ;;  %v2558_v6 = vld [vmem:[%s4478_s17 + $0x10] sm:$0xff] }
 0x812   : > { %v2302_v45 = vpop.permute.xlu1 %2301  ;;  %v1892_v10 = vadd.f32 %v1891_v7, %v1890_v51  ;;  %v2351_v50 = vrot.slane %v2350_v57, 1  ;;  %v1885_v40 = vadd.f32 %v1884_v26, %v1883_v49  ;;  %v1899_v20 = vsel %vm699_vm2, %v1854_v16, 0.0  ;;  %v1278_v16 = vld [vmem:[%s4533_s5 + $0x70] sm:$0xff] }
 0x813   : > { %v2316_v24 = vmul.f32 %v2302_v45, %v1941_v56  ;;  %v2309_v39 = vpop.permute.xlu0 %2308  ;;  %v2358_v34 = vrot.slane %v2357_v28, 1 }
 0x814   : > { %v2317_v38 = vmul.f32 %v2309_v39, %v1942_v59  ;;  %v1893_v33 = vrot.slane %v1892_v10, 4  ;;  %v2352_v14 = vadd.f32 %v2351_v50, %v2350_v57  ;;  %v1886_v7 = vrot.slane %v1885_v40, 2  ;;  %v1279_v59 = vld [vmem:[%s4533_s5 + $0x78] sm:$0xf] }
 0x815   : > { %v2360_v48 = vsel %vm699_vm2, %v2316_v24, 0.0  ;;  %v2359_v23 = vadd.f32 %v2358_v34, %v2357_v28  ;;  %v2392_v57 = vsel %vm1649_vm7, %v2345_v58, %v2391_v15  ;;  %v1879_v34 = vrot.slane %v1878_v4, 1 }
 0x816   : > { %v2361_v35 = vrot.slane %v2360_v48, 4  ;;  %v1812_v12 = vpop.permute.xlu1 %1811  ;;  %v2367_v32 = vsel %vm699_vm2, %v2317_v38, 0.0  ;;  %v1894_v3 = vadd.f32 %v1893_v33, %v1892_v10  ;;  %v2393_v19 = vsel %vm1652_vm8, %v2352_v14, %v2392_v57 }
 0x817   : > { %v1855_v31 = vmul.f32 %v1812_v12, %v1273_v46  ;;  %v1823_v13 = vpop.permute.xlu0 %1822  ;;  %v2368_v47 = vrot.slane %v2367_v32, 4  ;;  %v1887_v58 = vadd.f32 %v1886_v7, %v1885_v40  ;;  %v2394_v50 = vsel %vm1655_vm9, %v2359_v23, %v2393_v19  ;;  %v2657_v7 = vld [vmem:[%s4480_s19 + $0x18] sm:$0xff] }
 0x818   : > { %v2362_v18 = vadd.f32 %v2361_v35, %v2360_v48  ;;  %v1857_v60 = vmul.f32 %v1823_v13, %v1275_v52  ;;  %v1895_v11 = vrot.slane %v1894_v3, 2 }
 0x819   : > { %v1900_v54 = vsel %vm1863_vm12, %v1855_v31, 0.0  ;;  %v2369_v1 = vadd.f32 %v2368_v47, %v2367_v32  ;;  %v1869_v47 = vadd.f32 %v1868_v42, %v4273_v61  ;;  %v4534_v42 = vmov 0.0  }
 0x81a   : > { %v2363_v37 = vrot.slane %v2362_v18, 2  ;;  %v1901_v41 = vadd.f32 %v1900_v54, %v1899_v20  ;;  %v1819_v2 = vpop.permute.xlu1 %1818  ;;  %v1909_v62 = vsel %vm1863_vm12, %v1857_v60, 0.0  ;;  %v1896_v60 = vadd.f32 %v1895_v11, %v1894_v3 }
 0x81b   : > { %v1856_v43 = vmul.f32 %v1819_v2, %v1274_v44  ;;  %v1834_v29 = vpop.permute.xlu0 %1833  ;;  %v2370_v25 = vrot.slane %v2369_v1, 2  ;;  %v2654_v2 = vld [vmem:[%s4480_s19] sm:$0xff]  ;;  %v1888_v15 = vrot.slane %v1887_v58, 1  ;;  %v1870_v63 = vrot.slane %v1869_v47, 1 }
 0x81c   : > { %v2364_v0 = vadd.f32 %v2363_v37, %v2362_v18  ;;  %v1902_v56 = vrot.slane %v1901_v41, 4  ;;  %v1859_v51 = vmul.f32 %v1834_v29, %v1277_v30  ;;  %v2559_v18 = vld [vmem:[%s4478_s17 + $0x18] sm:$0xff]  ;;  %v2655_v30 = vld [vmem:[%s4480_s19 + $0x8] sm:$0xff]  ;;  %v1897_v27 = vrot.slane %v1896_v60, 1 }
 0x81d   : > { %v1908_v49 = vsel %vm699_vm2, %v1856_v43, 0.0  ;;  %v2371_v55 = vadd.f32 %v2370_v25, %v2369_v1  ;;  %v3158_v61 = vpack.c.bf16 %v2559_v18, %v2558_v6  ;;  %v3167_v29 = vpack.c.bf16 %v2655_v30, %v2654_v2 }
 0x81e   : > { %v2365_v17 = vrot.slane %v2364_v0, 1  ;;  %v1903_v36 = vadd.f32 %v1902_v56, %v1901_v41  ;;  %v1830_v45 = vpop.permute.xlu1 %1829  ;;  %v1910_v10 = vadd.f32 %v1909_v62, %v1908_v49  ;;  %v1918_v24 = vsel %vm1863_vm12, %v1859_v51, 0.0 }
 0x81f   : > { %v1858_v39 = vmul.f32 %v1830_v45, %v1276_v8  ;;  %v1845_v5 = vpop.permute.xlu0 %1844  ;;  %v2372_v26 = vrot.slane %v2371_v55, 1  ;;  %v2656_v8 = vld [vmem:[%s4480_s19 + $0x10] sm:$0xff]  ;;  %v1889_v49 = vadd.f32 %v1888_v15, %v1887_v58  ;;  %v1871_v51 = vadd.f32 %v1870_v63, %v1869_v47  ;;  %v2661_v58 = vld [vmem:[%s4481_s20 + $0x18] sm:$0xff]  ;;  %v2921_v47 = vld [vmem:[%s4479_s18] ss:$0 sm:$0xff] }
 0x820   : > { %v2366_v46 = vadd.f32 %v2365_v17, %v2364_v0  ;;  %v1904_v48 = vrot.slane %v1903_v36, 2  ;;  %v1911_v38 = vrot.slane %v1910_v10, 4  ;;  %v1861_v53 = vmul.f32 %v1845_v5, %v1279_v59 }
 0x821   : > { %v1917_v52 = vsel %vm699_vm2, %v1858_v39, 0.0  ;;  %v2373_v28 = vadd.f32 %v2372_v26, %v2371_v55  ;;  %v1880_v0 = vadd.f32 %v1879_v34, %v1878_v4  ;;  %v1898_v23 = vadd.f32 %v1897_v27, %v1896_v60 }
 0x822   : > { %v1919_v35 = vadd.f32 %v1918_v24, %v1917_v52  ;;  %v1841_v12 = vpop.permute.xlu1 %1840  ;;  %v1912_v33 = vadd.f32 %v1911_v38, %v1910_v10  ;;  %v1927_v32 = vsel %vm1863_vm12, %v1861_v53, 0.0  ;;  %v2395_v13 = vsel %vm1658_vm10, %v2366_v46, %v2394_v50  ;;  %v2659_v38 = vld [vmem:[%s4481_s20 + $0x8] sm:$0xff]  ;;  %v2660_v52 = vld [vmem:[%s4481_s20 + $0x10] sm:$0xff] }
 0x823   : > { %v1860_v31 = vmul.f32 %v1841_v12, %v1278_v16  ;;  %v4346_v9 = vsel %vm1661_vm11, %v2373_v28, %v2395_v13  ;;  %v1905_v40 = vadd.f32 %v1904_v48, %v1903_v36  ;;  %v3170_v36 = vpack.c.bf16 %v2657_v7, %v2656_v8  ;;  %v2658_v48 = vld [vmem:[%s4481_s20] sm:$0xff] }
 0x824   : > { %v1920_v44 = vrot.slane %v1919_v35, 4  ;;  %v1913_v20 = vrot.slane %v1912_v33, 2  ;;  %3060 = vmatmul.mubr.msk.f32.vlgmr.msra.gmra.mrb[6].mxu0 %vm699_vm2, %v4346_v9  ;;  %v2477_v45 = vsel %vm1643_vm5, %v1880_v0, %v1871_v51  ;;  %v3161_v53 = vpack.c.bf16 %v2659_v38, %v2658_v48 }
 0x825   : > { %v1926_v54 = vsel %vm699_vm2, %v1860_v31, 0.0  ;;  %3156 = vmatpush3.bf16.msra.mxu0 %v3155_v21  ;;  %3081 = vmatprep.mubr.msk.f32.mxu0 %vm3338_vm1, %v4534_v42  ;;  %v1906_v43 = vrot.slane %v1905_v40, 1  ;;  %v2478_v10 = vsel %vm1646_vm6, %v1889_v49, %v2477_v45  ;;  %v3164_v28 = vpack.c.bf16 %v2661_v58, %v2660_v52 }
 0x826   : > { %v1921_v37 = vadd.f32 %v1920_v44, %v1919_v35  ;;  %v1928_v1 = vadd.f32 %v1927_v32, %v1926_v54  ;;  %v1261_v41 = vpop.permute.xlu1 %1260  ;;  %v1914_v14 = vadd.f32 %v1913_v20, %v1912_v33  ;;  %3157 = vmatprep.subr.bf16.mxu0 %v4530_v22  ;;  %v2479_v39 = vsel %vm1649_vm7, %v1898_v23, %v2478_v10 }
 0x827   : > { %1263 = vst.msk [vmem:[#allocation3 + $0x8] sm:$0xff] %vm699_vm2, %v1261_v41  ;;  %v1907_v4 = vadd.f32 %v1906_v43, %v1905_v40 }
 0x828   : > { %v1922_v21 = vrot.slane %v1921_v37, 2  ;;  %v1929_v3 = vrot.slane %v1928_v1, 4  ;;  %v1915_v25 = vrot.slane %v1914_v14, 1 }
 0x829   : > { %3159 = vmatpush3.bf16.msra.mxu0 %v3158_v61  ;;  %v2480_v19 = vsel %vm1652_vm8, %v1907_v4, %v2479_v39 }
 0x82a   : > { %v1923_v56 = vadd.f32 %v1922_v21, %v1921_v37  ;;  %v1930_v62 = vadd.f32 %v1929_v3, %v1928_v1  ;;  %3166 = vmatprep.subr.bf16.mxu0 %v4530_v22  ;;  %v1916_v59 = vadd.f32 %v1915_v25, %v1914_v14 }
 0x82c   : > { %v1924_v17 = vrot.slane %v1923_v56, 1  ;;  %v1931_v55 = vrot.slane %v1930_v62, 2  ;;  %3082 = vmatmul.mubr.msk.f32.vlgmr.msra.gmra.mrb[8].mxu0 %vm699_vm2, %v1261_v41  ;;  %v2481_v46 = vsel %vm1655_vm9, %v1916_v59, %v2480_v19 }
 0x82d   : > { %3168 = vmatpush3.bf16.msra.mxu0 %v3167_v29  ;;  %3103 = vmatprep.mubr.msk.f32.mxu0 %vm3338_vm1, %v4534_v42 }
 0x82e   : > { %v1932_v57 = vadd.f32 %v1931_v55, %v1930_v62  ;;  %v1925_v24 = vadd.f32 %v1924_v17, %v1923_v56  ;;  %3169 = vmatprep.subr.bf16.mxu0 %v4530_v22 }
 0x830   : > { %v1933_v5 = vrot.slane %v1932_v57, 1  ;;  %v2482_v26 = vsel %vm1658_vm10, %v1925_v24, %v2481_v46 }
 0x831   : > { %3171 = vmatpush3.bf16.msra.mxu0 %v3170_v36 }
 0x832   : > { %v1934_v11 = vadd.f32 %v1933_v5, %v1932_v57 }
 0x834   : > { %v2483_v16 = vsel %vm1661_vm11, %v1934_v11, %v2482_v26  ;;  %3104 = vmatmul.mubr.msk.f32.vlgmr.msra.gmra.mrb[10].mxu0 %vm699_vm2, %v1261_v41 }
 0x835   : > { %3071 = vmatmul.mubr.msk.f32.vlgmr.msra.gmra.mrb[6].mxu1 %vm699_vm2, %v2483_v16 }
 0x836   : > { %3092 = vmatprep.mubr.msk.f32.mxu1 %vm3338_vm1, %v4534_v42  ;;  %3162 = vmatpush3.bf16.msra.mxu1 %v3161_v53  ;;  %v2925_v42 = vld [vmem:[%s4482_s21] ss:$0 sm:$0xff] }
 0x837   : > { %3163 = vmatprep.subr.bf16.mxu1 %v4530_v22 }
 0x83a   : > { %3165 = vmatpush3.bf16.msra.mxu1 %v3164_v28 }
 0x8f7   : > { %v2465_v35 = vpop.f32.mrb[6].mxu0 }
 0x8f8   : > { %v3061_v12 = vpop.f32.mrb[7].mxu0 }
 0x8ff   : > { %v2628_v50 = vpop.f32.mrb[8].mxu0 }
 0x900   : > { %v3083_v33 = vpop.f32.mrb[9].mxu0 }
 0x907   : > { %v2801_v31 = vpop.f32.mrb[10].mxu0 }
 0x908   : > { %v2552_v32 = vpop.f32.mrb[6].mxu1  ;;  %v3105_v18 = vpop.f32.mrb[11].mxu0 }
 0x909   : > { %v2553_v13 = vadd.f32 %v2552_v32, %v2465_v35  ;;  %v3072_v6 = vpop.f32.mrb[7].mxu1 }
 0x90b   : > { %v2632_v60 = vadd.f32 %v2628_v50, %v2553_v13 }
 0x90d   : > { %v2640_v44 = vadd.f32 %v2921_v47, %v2632_v60 }
 0x90f   : > { %v2922_v40 = vmul.f32 -1.442695, %v2640_v44 }
 0x911   : > { %3266 = vpow2.f32 %v2922_v40 }
 0x91b   : > { %v3267_v20 = vpop.eup %3266 }
 0x91c   : > { %v2644_v22 = vadd.f32 1.0, %v3267_v20 }
 0x91e   : > { %3268 = vrcp.f32 %v2644_v22 }
 0x928   : > { %v3269_v54 = vpop.eup %3268 }
 0x929   : > { %v2649_v34 = vsub.f32 1.0, %v3269_v54  ;;  %v2648_v37 = vmul.f32 %v3269_v54, %v2483_v16 }
 0x92b   : > { %v2651_v1 = vmul.f32 %v2649_v34, %v4346_v9 }
 0x92d   : > { %v2652_v41 = vadd.f32 %v2651_v1, %v2648_v37 }
 0x92f   : > { %2653 = vst.msk [vmem:[#allocation2] sm:$0xff] %vm699_vm2, %v2652_v41  ;;  %3093 = vmatmul.mubr.msk.f32.vlgmr.msra.gmra.mrb[8].mxu1 %vm699_vm2, %v2652_v41 }
 0xa02   : > { %v2731_v61 = vpop.f32.mrb[8].mxu1 }
 0xa03   : > { %v2802_v2 = vadd.f32 %v2801_v31, %v2731_v61  ;;  %v3094_v30 = vpop.f32.mrb[9].mxu1 }
 0xa05   : > { %v2812_v15 = vadd.f32 %v2925_v42, %v2802_v2 }
 0xa07   : > { %3270 = vtanh.f32 %v2812_v15 }
 0xa11   : > { %v3271_v9 = vpop.eup %3270 }
 0xa12   : > { %2814 = vst.msk [vmem:[%s4536_s30] sm:$0xff] %vm699_vm2, %v3271_v9 }
 0xa13   : > { %3285 = shalt.err (!%p3282_p4)
}
 0xa14   : > { %s3286_s2 = scalar_lea.hbm %s4414_s8, 128  ;;  %s3290_s30 = scalar_lea.hbm %s4483_s22, 768 }
 0xa15   : > { %p3287_p7 = scmp.ne.s32.totalorder %s4414_s8, %s3286_s2  ;;  %p3291_p10 = scmp.lt.u32.totalorder %s4414_s8, %s4483_s22 }
 0xa16   : > { %p3292_p11 = scmp.lt.u32.totalorder %s3290_s30, %s3286_s2  ;;  %p3294_p13 = scmp.lt.u32.totalorder %s3286_s2, %s4414_s8 }
 0xa17   : > { %p3288_p8 = pnand %p3287_p7, %p3497_p5 }
 0xa18   : > { %p3293_p12 = por %p3292_p11, %p3291_p10 }
 0xa19   : > { %p3289_p9 = pneg %p3288_p8 }
 0xa1a   : > { %p3295_p0 = por %p3294_p13, %p3293_p12 }
 0xa1c   : > { %p3296_p1 = pnand %p3295_p0, %p3289_p9 }
 0xa1e   : > { %3299 = shalt.err (!%p3296_p1)
}
 0xa1f   : > { %3172 = dma.vmem_to_hbm [thread:$0]  (%p3497_p5), %s4416_s3, 128, %s4414_s8, %s2816_s23  }
 0xa20 PF: > { %s4538_s26 = sld [smem:[#allocation9_spill]]  ;;  %s4539_s27 = sld [smem:[#allocation7_spill]] }
 0xa26   : > { %p3178_p2 = scmp.ge.s32.totalorder %s4538_s26, 2  ;;  %s2841_s1 = sand.u32 1, %s4539_s27  }
 0xa27   : > { %s2842_s0 = scalar_lea.sflag [#allocation5], %s2841_s1 }
 0xa28   : > { %p3175_p3 = pnand %p3178_p2, %p3501_p6 }
 0xa2a   : > { %3317 = dma.done.wait (!%p3175_p3), %s2842_s0, 128  }
 0xa2b   : > { %3319 = vsyncadd (!%p3175_p3), %s2842_s0, 4294967168  ;;  %s4541_s30 = sld [smem:[#allocation10_spill]]  ;;  %s4542_s2 = sld [smem:[#allocation8_spill]] }
 0xa2c   : > { %s4543_s29 = sld [smem:[#allocation11_spill]]  ;;  %s4544_s3 = smov %s3326_s28 }
 0xa31   : > { %p32_p4 = scmp.ge.s32.totalorder %s4541_s30, 8   ;;  %s4545_s28 = smov %s4542_s2 }
 0xa33   :  { %34 = sbr.rel (!%p32_p4) target bundleno = 14 (0xe), region = 152 }
 0xa3a   :  { %2847 = vsyncpa [#allocation5], 1 }
 0xa3b   :  { %2849 = vsyncpa [#allocation5 + $0x1], 1 }

</bundles_post_ra>
